<compile_context>
chip_gen: v5e
topology: v5e:2x2
jax: 0.10.0
libtpu: 0.0.40
codegen_flags: <defaults>
</compile_context>

<pallas_src>
import functools

import numpy as np

import jax
import jax.numpy as jnp
from jax.experimental import pallas as pl
from jax.experimental.pallas import tpu as pltpu

EPS_BN = 1e-5
EPS_LN = 1e-5
LANE = 128     # pad every feature dim to a multiple of 128 lanes

# ----------------------------------------------------------------------------
# Config (small, consistent with the module's __init__)
# ----------------------------------------------------------------------------
CFG = {
    "img_shape": 16,
    "model": {
        "encoder": {
            "conv_channels": [8, 16],
            "kernels": [3, 3],
            "strides": [2, 2],
            "activation": ["relu", "relu"],
            "norm": [True, True],
            "fc": [32, 32],
        }
    },
}


def calculate_conv_output(size, kernel, stride):
    return (size - kernel) // stride + 1


def _round_up(x, m):
    return ((x + m - 1) // m) * m


def _pick_tm(n):
    # 8 rows for toy batches (minimal padding waste); 128 rows once the batch
    # is real (full MXU height on v5e, half on v6e/v7x — use 256 there for
    # very large batches, and keep >=2 grid steps so v7x can shard across TCs).
    return 8 if n <= 8 else 128


def _vmem_capacity_bytes():
    try:
        return int(pltpu.get_tpu_info().vmem_capacity_bytes)
    except Exception:
        return 64 * 1024 * 1024   # v7x per-TensorCore floor


# ----------------------------------------------------------------------------
# Fused Pallas kernel: conv GEMMs (+ReLU+BN) then FC GEMMs (+LN+ReLU)
# ----------------------------------------------------------------------------
def _make_encoder_kernel(n_conv, n_fc, fc_real_dims):
    """Build the fused kernel for a fixed layer structure (unrolled at trace)."""

    def kernel(*refs):
        # refs = [x, (W, [scale;shift]) * n_conv, (W, [b;gamma;beta]) * n_fc, out]
        h = refs[0][...]                                   # (TM, in_pad) f32
        idx = 1
        for _ in range(n_conv):
            w_ref, v_ref = refs[idx], refs[idx + 1]
            idx += 2
            # bf16 x bf16 -> f32 accumulate on the MXU.
            h = jnp.dot(h.astype(jnp.bfloat16), w_ref[...],
                        preferred_element_type=jnp.float32)
            # Module order: Conv -> ReLU -> BatchNorm(eval) as scale/shift.
            h = jnp.maximum(h, 0.0) * v_ref[0:1, :] + v_ref[1:2, :]
        for li in range(n_fc):
            w_ref, v_ref = refs[idx], refs[idx + 1]
            idx += 2
            h = jnp.dot(h.astype(jnp.bfloat16), w_ref[...],
                        preferred_element_type=jnp.float32)
            h = h + v_ref[0:1, :]                          # bias (pad cols stay 0)
            # Maskless LN over the real width: padded columns of h are exactly
            # zero, so plain sums + E[x^2]-mu^2 give the real-column stats.
            inv_d = 1.0 / float(fc_real_dims[li])
            mu = jnp.sum(h, axis=-1, keepdims=True) * inv_d
            ex2 = jnp.sum(h * h, axis=-1, keepdims=True) * inv_d
            var = ex2 - mu * mu
            h = (h - mu) * jax.lax.rsqrt(var + EPS_LN)     # rsqrt -> EUP slot
            # gamma/beta are zero on padded columns -> pad cols return to 0.
            h = jnp.maximum(h * v_ref[1:2, :] + v_ref[2:3, :], 0.0)
        refs[-1][...] = h
    return kernel


# ----------------------------------------------------------------------------
# One-time parameter preparation (layout, padding, BN fold, flatten-perm fold)
# ----------------------------------------------------------------------------
def _conv_as_matrix(w_torch, H, W, stride, nchw_input=False):
    """Dense matrix M s.t. flatten_hwc(conv(x)) == flat(x) @ M  (VALID conv).

    Rows are indexed in NCHW-flat order when `nchw_input` (so the wrapper can
    feed torch-layout x with a plain reshape), else in HWC-flat order (the
    layout produced by the previous conv layer's columns).
    """
    w = np.asarray(w_torch, np.float32)                   # (Cout, Cin, kh, kw)
    Cout, Cin, kh, kw = w.shape
    Ho = (H - kh) // stride + 1
    Wo = (W - kw) // stride + 1
    M = np.zeros((H * W * Cin, Ho * Wo * Cout), np.float32)
    for ho in range(Ho):
        for wo in range(Wo):
            col = (ho * Wo + wo) * Cout
            for i in range(kh):
                for j in range(kw):
                    hh = ho * stride + i
                    ww = wo * stride + j
                    for ci in range(Cin):
                        if nchw_input:
                            row = ci * H * W + hh * W + ww
                        else:
                            row = (hh * W + ww) * Cin + ci
                        M[row, col:col + Cout] = w[:, ci, i, j]
    return M, Ho, Wo


def pack_params(params, cfg):
    """Pre-layout everything: padded, lane-dense, bf16, MXU-ready weights."""
    H = W = cfg["img_shape"]
    Cin = 3
    packed = {"conv": [], "fc": []}
    total_bytes = 0

    d_real = H * W * Cin
    d_pad = _round_up(d_real, LANE)
    packed["in_real"], packed["in_pad"] = d_real, d_pad

    for li, lp in enumerate(params["conv"]):
        # NCHW flatten order is folded into conv1's rows (no wrapper transpose).
        M, Ho, Wo = _conv_as_matrix(lp["w"], H, W, lp["stride"],
                                    nchw_input=(li == 0))
        Cout = int(lp["w"].shape[0])
        out_real = Ho * Wo * Cout
        out_pad = _round_up(out_real, LANE)

        w_pad = np.zeros((d_pad, out_pad), np.float32)
        w_pad[:d_real, :out_real] = M

        if lp["norm"]:
            scale_c = np.asarray(lp["gamma"]) / np.sqrt(np.asarray(lp["rvar"]) + EPS_BN)
            shift_c = np.asarray(lp["beta"]) - np.asarray(lp["rmean"]) * scale_c
        else:  # nn.Identity()
            scale_c = np.ones((Cout,), np.float32)
            shift_c = np.zeros((Cout,), np.float32)
        vec = np.zeros((2, out_pad), np.float32)           # [scale; shift]
        vec[0, :out_real] = np.tile(scale_c.astype(np.float32), Ho * Wo)
        vec[1, :out_real] = np.tile(shift_c.astype(np.float32), Ho * Wo)

        total_bytes += w_pad.size * 2 + vec.size * 4
        packed["conv"].append((jnp.asarray(w_pad, dtype=jnp.bfloat16),
                               jnp.asarray(vec)))
        H, W, Cin = Ho, Wo, Cout
        d_real, d_pad = out_real, out_pad

    # Fold torch's flatten(start_dim=1) (CHW order) into the first FC weight.
    first = True
    for lp in params["fc"]:
        w_t = np.asarray(lp["w"], np.float32).T            # (fc_in_real, fc_out_real)
        fc_in_real, fc_out_real = w_t.shape
        assert fc_in_real == d_real
        if first:
            torch_of_hwc = (np.arange(Cin * H * W).reshape(Cin, H, W)
                            .transpose(1, 2, 0).reshape(-1))
            w_t = w_t[torch_of_hwc, :]
            first = False
        out_pad = _round_up(fc_out_real, LANE)
        w_pad = np.zeros((d_pad, out_pad), np.float32)
        w_pad[:fc_in_real, :fc_out_real] = w_t

        vec = np.zeros((3, out_pad), np.float32)           # [bias; gamma; beta]
        vec[0, :fc_out_real] = np.asarray(lp["b"], np.float32)
        vec[1, :fc_out_real] = np.asarray(lp["gamma"], np.float32)
        vec[2, :fc_out_real] = np.asarray(lp["beta"], np.float32)

        total_bytes += w_pad.size * 2 + vec.size * 4
        packed["fc"].append((jnp.asarray(w_pad, dtype=jnp.bfloat16),
                             jnp.asarray(vec), fc_out_real))
        d_real, d_pad = fc_out_real, out_pad

    packed["out_real"], packed["out_pad"] = d_real, d_pad

    # Generation-aware guard (64 MiB/TC on v7x vs 128 MiB on v5e/v6e): the
    # dense conv lowering grows ~H^4 with img_shape.
    budget = _vmem_capacity_bytes() // 3
    if total_bytes > budget:
        # TODO(synk): replace the dense conv-matrix lowering with per-tap
        # shifted-slab matmuls (real 3x3 kernels held in VMEM) for large images.
        raise NotImplementedError(
            f"packed weights ({total_bytes} B) exceed the VMEM budget ({budget} B)")
    return packed


# ----------------------------------------------------------------------------
# Parameter initialization (deterministic, synthetic, torch layouts)
# ----------------------------------------------------------------------------
def init_params(key, cfg):
    enc = cfg["model"]["encoder"]
    params = {"conv": [], "fc": []}
    inp_channel = 3
    final_shape = cfg["img_shape"]
    for i, cout in enumerate(enc["conv_channels"]):
        k = enc["kernels"][i]
        key, kw_, kg, kb, km, kv = jax.random.split(key, 6)
        w = 0.1 * jax.random.normal(kw_, (cout, inp_channel, k, k), jnp.float32)
        gamma = 1.0 + 0.1 * jax.random.normal(kg, (cout,), jnp.float32)
        beta = 0.1 * jax.random.normal(kb, (cout,), jnp.float32)
        rmean = 0.1 * jax.random.normal(km, (cout,), jnp.float32)
        rvar = 1.0 + 0.1 * jnp.abs(jax.random.normal(kv, (cout,), jnp.float32))
        params["conv"].append(
            dict(w=w, gamma=gamma, beta=beta, rmean=rmean, rvar=rvar,
                 kernel=k, stride=enc["strides"][i], norm=enc["norm"][i]))
        inp_channel = cout
        final_shape = calculate_conv_output(final_shape, k, enc["strides"][i])
    fc_inp = final_shape ** 2 * inp_channel
    for fc_out in enc["fc"]:
        key, kw_, kb, kg, kbt = jax.random.split(key, 5)
        w = 0.1 * jax.random.normal(kw_, (fc_out, fc_inp), jnp.float32)  # torch layout
        b = 0.1 * jax.random.normal(kb, (fc_out,), jnp.float32)
        gamma = 1.0 + 0.1 * jax.random.normal(kg, (fc_out,), jnp.float32)
        beta = 0.1 * jax.random.normal(kbt, (fc_out,), jnp.float32)
        params["fc"].append(dict(w=w, b=b, gamma=gamma, beta=beta))
        fc_inp = fc_out
    return params, fc_inp


# ----------------------------------------------------------------------------
# Build the jitted, fully fused forward
# ----------------------------------------------------------------------------
def build_encoder_fn(packed):
    n_conv = len(packed["conv"])
    n_fc = len(packed["fc"])
    fc_real_dims = [t[2] for t in packed["fc"]]
    kernel = _make_encoder_kernel(n_conv, n_fc, fc_real_dims)

    in_pad = packed["in_pad"]
    out_pad = packed["out_pad"]
    out_real = packed["out_real"]

    weight_args = []
    weight_specs = []
    for (w, v) in packed["conv"]:
        for a in (w, v):
            weight_args.append(a)
            weight_specs.append(pl.BlockSpec(a.shape, lambda i: (0, 0)))
    for (w, v, _) in packed["fc"]:
        for a in (w, v):
            weight_args.append(a)
            weight_specs.append(pl.BlockSpec(a.shape, lambda i: (0, 0)))
    weight_args = tuple(weight_args)

    @jax.jit
    def forward(weights, x_nchw):
        n = x_nchw.shape[0]
        # NCHW flatten order is folded into conv1's rows: reshape + pad only,
        # no transpose pass over the activations.
        x = x_nchw.reshape(n, -1)
        tm = _pick_tm(n)
        m_pad = _round_up(n, tm)
        x = jnp.pad(x, ((0, m_pad - n), (0, in_pad - x.shape[1])))

        out = pl.pallas_call(
            kernel,
            out_shape=jax.ShapeDtypeStruct((m_pad, out_pad), jnp.float32),
            grid=(m_pad // tm,),
            in_specs=[pl.BlockSpec((tm, in_pad), lambda i: (i, 0))] + weight_specs,
            out_specs=pl.BlockSpec((tm, out_pad), lambda i: (i, 0)),
            compiler_params=pltpu.CompilerParams(
                dimension_semantics=("parallel",)),   # megacore-shardable batch axis
        )(x, *weights)
        return out[:n, :out_real]

    return functools.partial(forward, weight_args)


# ----------------------------------------------------------------------------
# Pure-JAX reference (for correctness check; f32 end to end)
# ----------------------------------------------------------------------------
def encoder_reference(params, x_nchw):
    x = jnp.transpose(x_nchw, (0, 2, 3, 1))
    N = x.shape[0]
    for lp in params["conv"]:
        w_hwio = jnp.transpose(lp["w"], (2, 3, 1, 0))
        y = jax.lax.conv_general_dilated(
            x, w_hwio, (lp["stride"], lp["stride"]), "VALID",
            dimension_numbers=("NHWC", "HWIO", "NHWC"))
        y = jnp.maximum(y, 0.0)
        if lp["norm"]:
            y = (y - lp["rmean"]) / jnp.sqrt(lp["rvar"] + EPS_BN) * lp["gamma"] + lp["beta"]
        x = y
    x = jnp.transpose(x, (0, 3, 1, 2)).reshape(N, -1)
    for lp in params["fc"]:
        h = x @ lp["w"].T + lp["b"]
        mu = jnp.mean(h, axis=-1, keepdims=True)
        var = jnp.mean((h - mu) ** 2, axis=-1, keepdims=True)
        hn = (h - mu) / jnp.sqrt(var + EPS_LN)
        x = jnp.maximum(hn * lp["gamma"] + lp["beta"], 0.0)
    return x


# ----------------------------------------------------------------------------
if __name__ == "__main__":
    key = jax.random.PRNGKey(0)
    key, kx, kp = jax.random.split(key, 3)

    # PyTorch-convention input: NCHW, N=2, C=3 (module hard-codes 3), H=W=16
    x = jax.random.normal(kx, (2, 3, 16, 16), jnp.float32)

    params, latent_dim = init_params(kp, CFG)
    packed = pack_params(params, CFG)
    encoder_forward = build_encoder_fn(packed)

    out = jax.block_until_ready(encoder_forward(x))

    ref = encoder_reference(params, x)
    assert out.shape == (2, CFG["model"]["encoder"]["fc"][-1]), out.shape
    assert jnp.allclose(out, ref, atol=5e-2, rtol=5e-2), float(
        jnp.max(jnp.abs(out - ref)))

    print("KERNEL_OK")
</pallas_src>

<mosaic_0001>
module attributes {stable_mosaic.version = 11 : i64} {
  func.func @kernel(%arg0: i32, %arg1: memref<8x768xf32, #tpu.memory_space<vmem>>, %arg2: memref<768x512xbf16, #tpu.memory_space<vmem>>, %arg3: memref<2x512xf32, #tpu.memory_space<vmem>>, %arg4: memref<512x256xbf16, #tpu.memory_space<vmem>>, %arg5: memref<2x256xf32, #tpu.memory_space<vmem>>, %arg6: memref<256x128xbf16, #tpu.memory_space<vmem>>, %arg7: memref<3x128xf32, #tpu.memory_space<vmem>>, %arg8: memref<128x128xbf16, #tpu.memory_space<vmem>>, %arg9: memref<3x128xf32, #tpu.memory_space<vmem>>, %arg10: memref<8x128xf32, #tpu.memory_space<vmem>>) attributes {dimension_semantics = [#tpu.dimension_semantics<parallel>], iteration_bounds = array<i64: 1>, scalar_prefetch = 0 : i64, scratch_operands = 0 : i64, tpu.core_type = #tpu.core_type<tc>, window_params = [{transform_indices = @transform_0, window_bounds = array<i64: 8, 768>}, {pipeline_mode = #tpu.pipeline_mode<synchronous>, transform_indices = @transform_1, window_bounds = array<i64: 768, 512>}, {pipeline_mode = #tpu.pipeline_mode<synchronous>, transform_indices = @transform_2, window_bounds = array<i64: 2, 512>}, {pipeline_mode = #tpu.pipeline_mode<synchronous>, transform_indices = @transform_3, window_bounds = array<i64: 512, 256>}, {pipeline_mode = #tpu.pipeline_mode<synchronous>, transform_indices = @transform_4, window_bounds = array<i64: 2, 256>}, {pipeline_mode = #tpu.pipeline_mode<synchronous>, transform_indices = @transform_5, window_bounds = array<i64: 256, 128>}, {pipeline_mode = #tpu.pipeline_mode<synchronous>, transform_indices = @transform_6, window_bounds = array<i64: 3, 128>}, {pipeline_mode = #tpu.pipeline_mode<synchronous>, transform_indices = @transform_7, window_bounds = array<i64: 128, 128>}, {pipeline_mode = #tpu.pipeline_mode<synchronous>, transform_indices = @transform_8, window_bounds = array<i64: 3, 128>}, {transform_indices = @transform_9, window_bounds = array<i64: 8, 128>}]} {
    %c0 = arith.constant 0 : index
    %c0_0 = arith.constant 0 : index
    %0 = vector.load %arg1[%c0, %c0_0] : memref<8x768xf32, #tpu.memory_space<vmem>>, vector<8x768xf32>
    %1 = arith.truncf %0 : vector<8x768xf32> to vector<8x768xbf16>
    %c0_1 = arith.constant 0 : index
    %c0_2 = arith.constant 0 : index
    %2 = vector.load %arg2[%c0_1, %c0_2] : memref<768x512xbf16, #tpu.memory_space<vmem>>, vector<768x512xbf16>
    %cst = arith.constant dense<0.000000e+00> : vector<8x512xf32>
    %3 = tpu.matmul %1, %2, %cst {dimension_numbers = #tpu.dot_dimension_numbers<[1], [0], [0], [1], [0, 0, 1, 1], [], []>} : vector<8x768xbf16>, vector<768x512xbf16>, vector<8x512xf32> -> vector<8x512xf32>
    %cst_3 = arith.constant 0.000000e+00 : f32
    %4 = vector.broadcast %cst_3 : f32 to vector<8x512xf32>
    %5 = arith.maximumf %3, %4 : vector<8x512xf32>
    %c0_4 = arith.constant 0 : index
    %c0_5 = arith.constant 0 : index
    %6 = vector.load %arg3[%c0_4, %c0_5] : memref<2x512xf32, #tpu.memory_space<vmem>>, vector<1x512xf32>
    %7 = vector.broadcast %6 : vector<1x512xf32> to vector<8x512xf32>
    %8 = arith.mulf %5, %7 : vector<8x512xf32>
    %c1 = arith.constant 1 : index
    %c0_6 = arith.constant 0 : index
    %9 = vector.load %arg3[%c1, %c0_6] : memref<2x512xf32, #tpu.memory_space<vmem>>, vector<1x512xf32>
    %10 = vector.broadcast %9 : vector<1x512xf32> to vector<8x512xf32>
    %11 = arith.addf %8, %10 : vector<8x512xf32>
    %12 = arith.truncf %11 : vector<8x512xf32> to vector<8x512xbf16>
    %c0_7 = arith.constant 0 : index
    %c0_8 = arith.constant 0 : index
    %13 = vector.load %arg4[%c0_7, %c0_8] : memref<512x256xbf16, #tpu.memory_space<vmem>>, vector<512x256xbf16>
    %cst_9 = arith.constant dense<0.000000e+00> : vector<8x256xf32>
    %14 = tpu.matmul %12, %13, %cst_9 {dimension_numbers = #tpu.dot_dimension_numbers<[1], [0], [0], [1], [0, 0, 1, 1], [], []>} : vector<8x512xbf16>, vector<512x256xbf16>, vector<8x256xf32> -> vector<8x256xf32>
    %cst_10 = arith.constant 0.000000e+00 : f32
    %15 = vector.broadcast %cst_10 : f32 to vector<8x256xf32>
    %16 = arith.maximumf %14, %15 : vector<8x256xf32>
    %c0_11 = arith.constant 0 : index
    %c0_12 = arith.constant 0 : index
    %17 = vector.load %arg5[%c0_11, %c0_12] : memref<2x256xf32, #tpu.memory_space<vmem>>, vector<1x256xf32>
    %18 = vector.broadcast %17 : vector<1x256xf32> to vector<8x256xf32>
    %19 = arith.mulf %16, %18 : vector<8x256xf32>
    %c1_13 = arith.constant 1 : index
    %c0_14 = arith.constant 0 : index
    %20 = vector.load %arg5[%c1_13, %c0_14] : memref<2x256xf32, #tpu.memory_space<vmem>>, vector<1x256xf32>
    %21 = vector.broadcast %20 : vector<1x256xf32> to vector<8x256xf32>
    %22 = arith.addf %19, %21 : vector<8x256xf32>
    %23 = arith.truncf %22 : vector<8x256xf32> to vector<8x256xbf16>
    %c0_15 = arith.constant 0 : index
    %c0_16 = arith.constant 0 : index
    %24 = vector.load %arg6[%c0_15, %c0_16] : memref<256x128xbf16, #tpu.memory_space<vmem>>, vector<256x128xbf16>
    %cst_17 = arith.constant dense<0.000000e+00> : vector<8x128xf32>
    %25 = tpu.matmul %23, %24, %cst_17 {dimension_numbers = #tpu.dot_dimension_numbers<[1], [0], [0], [1], [0, 0, 1, 1], [], []>} : vector<8x256xbf16>, vector<256x128xbf16>, vector<8x128xf32> -> vector<8x128xf32>
    %c0_18 = arith.constant 0 : index
    %c0_19 = arith.constant 0 : index
    %26 = vector.load %arg7[%c0_18, %c0_19] : memref<3x128xf32, #tpu.memory_space<vmem>>, vector<1x128xf32>
    %27 = vector.broadcast %26 : vector<1x128xf32> to vector<8x128xf32>
    %28 = arith.addf %25, %27 : vector<8x128xf32>
    %cst_20 = arith.constant dense<0.000000e+00> : vector<8xf32>
    %29 = vector.multi_reduction <add>, %28, %cst_20 [1] : vector<8x128xf32> to vector<8xf32>
    %30 = vector.shape_cast %29 : vector<8xf32> to vector<8x1xf32>
    %cst_21 = arith.constant 3.125000e-02 : f32
    %31 = vector.broadcast %cst_21 : f32 to vector<8x1xf32>
    %32 = arith.mulf %30, %31 : vector<8x1xf32>
    %33 = arith.mulf %28, %28 : vector<8x128xf32>
    %cst_22 = arith.constant dense<0.000000e+00> : vector<8xf32>
    %34 = vector.multi_reduction <add>, %33, %cst_22 [1] : vector<8x128xf32> to vector<8xf32>
    %35 = vector.shape_cast %34 : vector<8xf32> to vector<8x1xf32>
    %cst_23 = arith.constant 3.125000e-02 : f32
    %36 = vector.broadcast %cst_23 : f32 to vector<8x1xf32>
    %37 = arith.mulf %35, %36 : vector<8x1xf32>
    %38 = arith.mulf %32, %32 : vector<8x1xf32>
    %39 = arith.subf %37, %38 : vector<8x1xf32>
    %40 = vector.broadcast %32 : vector<8x1xf32> to vector<8x128xf32>
    %41 = arith.subf %28, %40 : vector<8x128xf32>
    %cst_24 = arith.constant 9.99999974E-6 : f32
    %42 = vector.broadcast %cst_24 : f32 to vector<8x1xf32>
    %43 = arith.addf %39, %42 : vector<8x1xf32>
    %44 = math.rsqrt %43 : vector<8x1xf32>
    %45 = vector.broadcast %44 : vector<8x1xf32> to vector<8x128xf32>
    %46 = arith.mulf %41, %45 : vector<8x128xf32>
    %c1_25 = arith.constant 1 : index
    %c0_26 = arith.constant 0 : index
    %47 = vector.load %arg7[%c1_25, %c0_26] : memref<3x128xf32, #tpu.memory_space<vmem>>, vector<1x128xf32>
    %48 = vector.broadcast %47 : vector<1x128xf32> to vector<8x128xf32>
    %49 = arith.mulf %46, %48 : vector<8x128xf32>
    %c2 = arith.constant 2 : index
    %c0_27 = arith.constant 0 : index
    %50 = vector.load %arg7[%c2, %c0_27] : memref<3x128xf32, #tpu.memory_space<vmem>>, vector<1x128xf32>
    %51 = vector.broadcast %50 : vector<1x128xf32> to vector<8x128xf32>
    %52 = arith.addf %49, %51 : vector<8x128xf32>
    %cst_28 = arith.constant 0.000000e+00 : f32
    %53 = vector.broadcast %cst_28 : f32 to vector<8x128xf32>
    %54 = arith.maximumf %52, %53 : vector<8x128xf32>
    %55 = arith.truncf %54 : vector<8x128xf32> to vector<8x128xbf16>
    %c0_29 = arith.constant 0 : index
    %c0_30 = arith.constant 0 : index
    %56 = vector.load %arg8[%c0_29, %c0_30] : memref<128x128xbf16, #tpu.memory_space<vmem>>, vector<128x128xbf16>
    %cst_31 = arith.constant dense<0.000000e+00> : vector<8x128xf32>
    %57 = tpu.matmul %55, %56, %cst_31 {dimension_numbers = #tpu.dot_dimension_numbers<[1], [0], [0], [1], [0, 0, 1, 1], [], []>} : vector<8x128xbf16>, vector<128x128xbf16>, vector<8x128xf32> -> vector<8x128xf32>
    %c0_32 = arith.constant 0 : index
    %c0_33 = arith.constant 0 : index
    %58 = vector.load %arg9[%c0_32, %c0_33] : memref<3x128xf32, #tpu.memory_space<vmem>>, vector<1x128xf32>
    %59 = vector.broadcast %58 : vector<1x128xf32> to vector<8x128xf32>
    %60 = arith.addf %57, %59 : vector<8x128xf32>
    %cst_34 = arith.constant dense<0.000000e+00> : vector<8xf32>
    %61 = vector.multi_reduction <add>, %60, %cst_34 [1] : vector<8x128xf32> to vector<8xf32>
    %62 = vector.shape_cast %61 : vector<8xf32> to vector<8x1xf32>
    %cst_35 = arith.constant 3.125000e-02 : f32
    %63 = vector.broadcast %cst_35 : f32 to vector<8x1xf32>
    %64 = arith.mulf %62, %63 : vector<8x1xf32>
    %65 = arith.mulf %60, %60 : vector<8x128xf32>
    %cst_36 = arith.constant dense<0.000000e+00> : vector<8xf32>
    %66 = vector.multi_reduction <add>, %65, %cst_36 [1] : vector<8x128xf32> to vector<8xf32>
    %67 = vector.shape_cast %66 : vector<8xf32> to vector<8x1xf32>
    %cst_37 = arith.constant 3.125000e-02 : f32
    %68 = vector.broadcast %cst_37 : f32 to vector<8x1xf32>
    %69 = arith.mulf %67, %68 : vector<8x1xf32>
    %70 = arith.mulf %64, %64 : vector<8x1xf32>
    %71 = arith.subf %69, %70 : vector<8x1xf32>
    %72 = vector.broadcast %64 : vector<8x1xf32> to vector<8x128xf32>
    %73 = arith.subf %60, %72 : vector<8x128xf32>
    %cst_38 = arith.constant 9.99999974E-6 : f32
    %74 = vector.broadcast %cst_38 : f32 to vector<8x1xf32>
    %75 = arith.addf %71, %74 : vector<8x1xf32>
    %76 = math.rsqrt %75 : vector<8x1xf32>
    %77 = vector.broadcast %76 : vector<8x1xf32> to vector<8x128xf32>
    %78 = arith.mulf %73, %77 : vector<8x128xf32>
    %c1_39 = arith.constant 1 : index
    %c0_40 = arith.constant 0 : index
    %79 = vector.load %arg9[%c1_39, %c0_40] : memref<3x128xf32, #tpu.memory_space<vmem>>, vector<1x128xf32>
    %80 = vector.broadcast %79 : vector<1x128xf32> to vector<8x128xf32>
    %81 = arith.mulf %78, %80 : vector<8x128xf32>
    %c2_41 = arith.constant 2 : index
    %c0_42 = arith.constant 0 : index
    %82 = vector.load %arg9[%c2_41, %c0_42] : memref<3x128xf32, #tpu.memory_space<vmem>>, vector<1x128xf32>
    %83 = vector.broadcast %82 : vector<1x128xf32> to vector<8x128xf32>
    %84 = arith.addf %81, %83 : vector<8x128xf32>
    %cst_43 = arith.constant 0.000000e+00 : f32
    %85 = vector.broadcast %cst_43 : f32 to vector<8x128xf32>
    %86 = arith.maximumf %84, %85 : vector<8x128xf32>
    %c0_44 = arith.constant 0 : index
    %c0_45 = arith.constant 0 : index
    %87 = vector.load %arg10[%c0_44, %c0_45] : memref<8x128xf32, #tpu.memory_space<vmem>>, vector<8x128xf32>
    tpu.vector_store %arg10[%c0_44, %c0_45], %86 {strides = array<i32>} : memref<8x128xf32, #tpu.memory_space<vmem>>, vector<8x128xf32>,
    return
  }
  func.func @transform_0(%arg0: i32) -> (i32, i32) {
    %c0_i32 = arith.constant 0 : i32
    %c0_i32_0 = arith.constant 0 : i32
    return %arg0, %c0_i32 : i32, i32
  }
  func.func @transform_1(%arg0: i32) -> (i32, i32) {
    %c0_i32 = arith.constant 0 : i32
    %c0_i32_0 = arith.constant 0 : i32
    %c0_i32_1 = arith.constant 0 : i32
    return %c0_i32, %c0_i32_0 : i32, i32
  }
  func.func @transform_2(%arg0: i32) -> (i32, i32) {
    %c0_i32 = arith.constant 0 : i32
    %c0_i32_0 = arith.constant 0 : i32
    %c0_i32_1 = arith.constant 0 : i32
    return %c0_i32, %c0_i32_0 : i32, i32
  }
  func.func @transform_3(%arg0: i32) -> (i32, i32) {
    %c0_i32 = arith.constant 0 : i32
    %c0_i32_0 = arith.constant 0 : i32
    %c0_i32_1 = arith.constant 0 : i32
    return %c0_i32, %c0_i32_0 : i32, i32
  }
  func.func @transform_4(%arg0: i32) -> (i32, i32) {
    %c0_i32 = arith.constant 0 : i32
    %c0_i32_0 = arith.constant 0 : i32
    %c0_i32_1 = arith.constant 0 : i32
    return %c0_i32, %c0_i32_0 : i32, i32
  }
  func.func @transform_5(%arg0: i32) -> (i32, i32) {
    %c0_i32 = arith.constant 0 : i32
    %c0_i32_0 = arith.constant 0 : i32
    %c0_i32_1 = arith.constant 0 : i32
    return %c0_i32, %c0_i32_0 : i32, i32
  }
  func.func @transform_6(%arg0: i32) -> (i32, i32) {
    %c0_i32 = arith.constant 0 : i32
    %c0_i32_0 = arith.constant 0 : i32
    %c0_i32_1 = arith.constant 0 : i32
    return %c0_i32, %c0_i32_0 : i32, i32
  }
  func.func @transform_7(%arg0: i32) -> (i32, i32) {
    %c0_i32 = arith.constant 0 : i32
    %c0_i32_0 = arith.constant 0 : i32
    %c0_i32_1 = arith.constant 0 : i32
    return %c0_i32, %c0_i32_0 : i32, i32
  }
  func.func @transform_8(%arg0: i32) -> (i32, i32) {
    %c0_i32 = arith.constant 0 : i32
    %c0_i32_0 = arith.constant 0 : i32
    %c0_i32_1 = arith.constant 0 : i32
    return %c0_i32, %c0_i32_0 : i32, i32
  }
  func.func @transform_9(%arg0: i32) -> (i32, i32) {
    %c0_i32 = arith.constant 0 : i32
    %c0_i32_0 = arith.constant 0 : i32
    return %arg0, %c0_i32 : i32, i32
  }
}

</mosaic_0001>

<bundles_post_ra>
// kernel: forward.1
= control target key start
LH: loop header
LB: loop body
LE: loop exit
PB: predicated region body
PF: predicated region fallthrough
CT: control target
= control target key end

     0   :  { %14 = vsyncpa [#allocation3], 0  ;;  %s4127_s0 = inlined_call_operand.vmem [shape: f32[8,768], index: 0, kind: input, shape index: {}]   ;;  %s4128_s1 = inlined_call_operand.hbm [shape: bf16[768,512], index: 1, kind: input, shape index: {}]   ;;  %s4129_s2 = inlined_call_operand.vmem [shape: f32[2,512], index: 2, kind: input, shape index: {}]   ;;  %s4130_s3 = inlined_call_operand.hbm [shape: bf16[512,256], index: 3, kind: input, shape index: {}]   ;;  %s4131_s4 = inlined_call_operand.vmem [shape: f32[2,256], index: 4, kind: input, shape index: {}]   ;;  %s4132_s5 = inlined_call_operand.vmem [shape: bf16[256,128], index: 5, kind: input, shape index: {}]   ;;  %s4133_s6 = inlined_call_operand.vmem [shape: f32[3,128], index: 6, kind: input, shape index: {}]   ;;  %s4134_s7 = inlined_call_operand.hbm [shape: bf16[128,128], index: 7, kind: input, shape index: {}]   ;;  %s4135_s8 = inlined_call_operand.vmem [shape: f32[3,128], index: 8, kind: input, shape index: {}]   ;;  %s4136_s9 = inlined_call_operand.vmem [shape: f32[8,128], index: 9, kind: output, shape index: {}]  }
   0x1   :  { %15 = vsyncpa [#allocation5], 0  ;;  %s37_s11 = sshll.u32 %s4130_s3, 4  ;;  %s3899_s12 = smov [#allocation4]   ;;  %s38_s11 = int_to_ptr.hbm [resolvable:$true] %s37_s11 }
   0x2   :  { %s39_s13 = sshll.u32 %s3899_s12, 4  ;;  %s22_s16 = sshll.u32 %s4128_s1, 4  ;;  %s40_s13 = int_to_ptr.vmem [resolvable:$true] %s39_s13  ;;  %s23_s16 = int_to_ptr.hbm [resolvable:$true] %s22_s16 }
   0x3   :  { %s3900_s17 = smov 128   ;;  %s3901_s18 = smov 8  }
   0x4   :  { %45 = dma.hbm_to_vmem [thread:$0]  %s38_s11, 8192, %s40_s13, [#allocation5], %s3900_s17, %s3900_s17, %s3901_s18  }
   0x5   :  { %s3902_s19 = smov [#allocation2]   ;;  %s3903_s21 = smov 256  }
   0x6   :  { %s24_s20 = sshll.u32 %s3902_s19, 4  ;;  %s3904_s22 = smov 16   ;;  %s25_s20 = int_to_ptr.vmem [resolvable:$true] %s24_s20 }
   0x7   :  { %30 = dma.hbm_to_vmem [thread:$0]  %s23_s16, 24576, %s25_s20, [#allocation3], %s3903_s21, %s3903_s21, %s3904_s22  }
   0x8   :  { %s56_s24 = sshll.u32 %s4134_s7, 4  ;;  %s3905_s25 = smov [#allocation6]   ;;  %s57_s24 = int_to_ptr.hbm [resolvable:$true] %s56_s24 }
   0x9   :  { %s58_s26 = sshll.u32 %s3905_s25, 4  ;;  %s3906_s27 = smov 64   ;;  %s59_s26 = int_to_ptr.vmem [resolvable:$true] %s58_s26 }
   0xa   :  { %s3907_s1 = smov 4  }
   0xb   :  { %64 = dma.hbm_to_vmem [thread:$0]  %s57_s24, 1024, %s59_s26, [#allocation5], %s3906_s27, %s3906_s27, %s3907_s1  }
   0xc   :  { %3895 = dma.done.wait [#allocation3], 24576  }
   0xd   :  { %3896 = vsyncadd [#allocation3], 4294942720 }
   0xe   :  { %3897 = dma.done.wait [#allocation5], 9216  }
   0xf   :  { %3898 = vsyncadd [#allocation5], 4294958080  ;;  %v2516_v0 = vld [vmem:[#allocation2 + $0xe0] sm:$0xf]  ;;  %v3554_v1 = vld [vmem:[#allocation2 + $0xec] sm:$0xf0] }
  0x10   :  { %v2644_v2 = vld [vmem:[#allocation2 + $0x1e0] sm:$0xf]  ;;  %v2517_v3 = vor.u32 %v3554_v1, %v2516_v0  ;;  %v3586_v4 = vld [vmem:[#allocation2 + $0x1ec] sm:$0xf0] }
  0x11   :  { %v2772_v5 = vld [vmem:[#allocation2 + $0x2e0] sm:$0xf]  ;;  %v3618_v6 = vld [vmem:[#allocation2 + $0x2ec] sm:$0xf0]  ;;  %v2645_v7 = vor.u32 %v3586_v4, %v2644_v2 }
  0x12   :  { %v2773_v8 = vor.u32 %v3618_v6, %v2772_v5  ;;  %v2900_v9 = vld [vmem:[#allocation2 + $0x3e0] sm:$0xf]  ;;  %v3650_v10 = vld [vmem:[#allocation2 + $0x3ec] sm:$0xf0]  ;;  %1243 = vmatpush.bf16.msra.mxu0 %v2517_v3 }
  0x13   :  { %v2500_v11 = vld [vmem:[#allocation2 + $0xc0] sm:$0xf]  ;;  %v2901_v12 = vor.u32 %v3650_v10, %v2900_v9  ;;  %v3550_v13 = vld [vmem:[#allocation2 + $0xcc] sm:$0xf0]  ;;  %1256 = vmatpush.bf16.msra.mxu1 %v2645_v7 }
  0x14   :  { %v2628_v14 = vld [vmem:[#allocation2 + $0x1c0] sm:$0xf]  ;;  %v3582_v15 = vld [vmem:[#allocation2 + $0x1cc] sm:$0xf0]  ;;  %1269 = vmatpush.bf16.msra.mxu2 %v2773_v8  ;;  %v2501_v16 = vor.u32 %v3550_v13, %v2500_v11 }
  0x15   :  { %v2629_v17 = vor.u32 %v3582_v15, %v2628_v14  ;;  %v2756_v18 = vld [vmem:[#allocation2 + $0x2c0] sm:$0xf]  ;;  %v3614_v19 = vld [vmem:[#allocation2 + $0x2cc] sm:$0xf0]  ;;  %1282 = vmatpush.bf16.msra.mxu3 %v2901_v12 }
  0x16   :  { %v2884_v20 = vld [vmem:[#allocation2 + $0x3c0] sm:$0xf]  ;;  %v2757_v21 = vor.u32 %v3614_v19, %v2756_v18  ;;  %v3646_v22 = vld [vmem:[#allocation2 + $0x3cc] sm:$0xf0]  ;;  %1244 = vmatpush.bf16.msra.mxu0 %v2501_v16 }
  0x17   :  { %v2484_v23 = vld [vmem:[#allocation2 + $0xa0] sm:$0xf]  ;;  %v3546_v24 = vld [vmem:[#allocation2 + $0xac] sm:$0xf0]  ;;  %v2885_v25 = vor.u32 %v3646_v22, %v2884_v20  ;;  %1257 = vmatpush.bf16.msra.mxu1 %v2629_v17 }
  0x18   :  { %v2612_v26 = vld [vmem:[#allocation2 + $0x1a0] sm:$0xf]  ;;  %v3578_v27 = vld [vmem:[#allocation2 + $0x1ac] sm:$0xf0]  ;;  %v2485_v29 = vor.u32 %v3546_v24, %v2484_v23  ;;  %1270 = vmatpush.bf16.msra.mxu2 %v2757_v21 }
  0x19   :  { %v2740_v28 = vld [vmem:[#allocation2 + $0x2a0] sm:$0xf]  ;;  %v3610_v30 = vld [vmem:[#allocation2 + $0x2ac] sm:$0xf0]  ;;  %v2613_v33 = vor.u32 %v3578_v27, %v2612_v26  ;;  %1283 = vmatpush.bf16.msra.mxu3 %v2885_v25 }
  0x1a   :  { %v2868_v31 = vld [vmem:[#allocation2 + $0x3a0] sm:$0xf]  ;;  %v3642_v32 = vld [vmem:[#allocation2 + $0x3ac] sm:$0xf0]  ;;  %v2741_v34 = vor.u32 %v3610_v30, %v2740_v28  ;;  %1245 = vmatpush.bf16.msra.mxu0 %v2485_v29 }
  0x1b   :  { %v2468_v35 = vld [vmem:[#allocation2 + $0x80] sm:$0xf]  ;;  %v3542_v36 = vld [vmem:[#allocation2 + $0x8c] sm:$0xf0]  ;;  %v2869_v38 = vor.u32 %v3642_v32, %v2868_v31  ;;  %1258 = vmatpush.bf16.msra.mxu1 %v2613_v33  ;;  %v3552_v33 = vld [vmem:[#allocation2 + $0xe4] sm:$0xf] }
  0x1c   :  { %v2596_v37 = vld [vmem:[#allocation2 + $0x180] sm:$0xf]  ;;  %v3574_v39 = vld [vmem:[#allocation2 + $0x18c] sm:$0xf0]  ;;  %v2469_v44 = vor.u32 %v3542_v36, %v2468_v35  ;;  %1271 = vmatpush.bf16.msra.mxu2 %v2741_v34  ;;  %v2518_v34 = vld [vmem:[#allocation2 + $0xf0] sm:$0xf0] }
  0x1d   :  { %v2724_v40 = vld [vmem:[#allocation2 + $0x280] sm:$0xf]  ;;  %v3606_v41 = vld [vmem:[#allocation2 + $0x28c] sm:$0xf0]  ;;  %v2597_v45 = vor.u32 %v3574_v39, %v2596_v37  ;;  %1284 = vmatpush.bf16.msra.mxu3 %v2869_v38  ;;  %v3584_v37 = vld [vmem:[#allocation2 + $0x1e4] sm:$0xf] }
  0x1e   :  { %v2852_v42 = vld [vmem:[#allocation2 + $0x380] sm:$0xf]  ;;  %v3638_v43 = vld [vmem:[#allocation2 + $0x38c] sm:$0xf0]  ;;  %v2725_v46 = vor.u32 %v3606_v41, %v2724_v40  ;;  %1246 = vmatpush.bf16.msra.mxu0 %v2469_v44  ;;  %v2646_v38 = vld [vmem:[#allocation2 + $0x1f0] sm:$0xf0] }
  0x1f   :  { %v2452_v47 = vld [vmem:[#allocation2 + $0x60] sm:$0xf]  ;;  %v3538_v48 = vld [vmem:[#allocation2 + $0x6c] sm:$0xf0]  ;;  %v2853_v50 = vor.u32 %v3638_v43, %v2852_v42  ;;  %1259 = vmatpush.bf16.msra.mxu1 %v2597_v45  ;;  %v2521_v42 = vor.u32 %v3552_v33, %v2518_v34 }
  0x20   :  { %v2580_v49 = vld [vmem:[#allocation2 + $0x160] sm:$0xf]  ;;  %v3570_v51 = vld [vmem:[#allocation2 + $0x16c] sm:$0xf0]  ;;  %v2453_v56 = vor.u32 %v3538_v48, %v2452_v47  ;;  %1272 = vmatpush.bf16.msra.mxu2 %v2725_v46  ;;  %v2649_v46 = vor.u32 %v3584_v37, %v2646_v38  ;;  %v3548_v48 = vld [vmem:[#allocation2 + $0xc4] sm:$0xf] }
  0x21   :  { %v2708_v52 = vld [vmem:[#allocation2 + $0x260] sm:$0xf]  ;;  %v3602_v53 = vld [vmem:[#allocation2 + $0x26c] sm:$0xf0]  ;;  %v2581_v57 = vor.u32 %v3570_v51, %v2580_v49  ;;  %1285 = vmatpush.bf16.msra.mxu3 %v2853_v50  ;;  %v2502_v49 = vld [vmem:[#allocation2 + $0xd0] sm:$0xf0] }
  0x22   :  { %v2836_v54 = vld [vmem:[#allocation2 + $0x360] sm:$0xf]  ;;  %v3634_v55 = vld [vmem:[#allocation2 + $0x36c] sm:$0xf0]  ;;  %v2709_v58 = vor.u32 %v3602_v53, %v2708_v52  ;;  %1247 = vmatpush.bf16.msra.mxu0 %v2453_v56  ;;  %v3580_v50 = vld [vmem:[#allocation2 + $0x1c4] sm:$0xf] }
  0x23   :  { %v2436_v59 = vld [vmem:[#allocation2 + $0x40] sm:$0xf]  ;;  %v3534_v60 = vld [vmem:[#allocation2 + $0x4c] sm:$0xf0]  ;;  %v2837_v62 = vor.u32 %v3634_v55, %v2836_v54  ;;  %1260 = vmatpush.bf16.msra.mxu1 %v2581_v57  ;;  %v2630_v51 = vld [vmem:[#allocation2 + $0x1d0] sm:$0xf0]  ;;  %v2505_v55 = vor.u32 %v3548_v48, %v2502_v49 }
  0x24   :  { %v2564_v61 = vld [vmem:[#allocation2 + $0x140] sm:$0xf]  ;;  %v3566_v63 = vld [vmem:[#allocation2 + $0x14c] sm:$0xf0]  ;;  %v2437_v4 = vor.u32 %v3534_v60, %v2436_v59  ;;  %1273 = vmatpush.bf16.msra.mxu2 %v2709_v58  ;;  %v2633_v59 = vor.u32 %v3580_v50, %v2630_v51  ;;  %v3544_v60 = vld [vmem:[#allocation2 + $0xa4] sm:$0xf] }
  0x25   :  { %v2692_v0 = vld [vmem:[#allocation2 + $0x240] sm:$0xf]  ;;  %v3598_v1 = vld [vmem:[#allocation2 + $0x24c] sm:$0xf0]  ;;  %v2565_v5 = vor.u32 %v3566_v63, %v2564_v61  ;;  %1286 = vmatpush.bf16.msra.mxu3 %v2837_v62  ;;  %v2486_v61 = vld [vmem:[#allocation2 + $0xb0] sm:$0xf0] }
  0x26   :  { %v2820_v2 = vld [vmem:[#allocation2 + $0x340] sm:$0xf]  ;;  %v3630_v3 = vld [vmem:[#allocation2 + $0x34c] sm:$0xf0]  ;;  %v2693_v6 = vor.u32 %v3598_v1, %v2692_v0  ;;  %1248 = vmatpush.bf16.msra.mxu0 %v2437_v4  ;;  %v3576_v62 = vld [vmem:[#allocation2 + $0x1a4] sm:$0xf] }
  0x27   :  { %v2420_v7 = vld [vmem:[#allocation2 + $0x20] sm:$0xf]  ;;  %v3530_v8 = vld [vmem:[#allocation2 + $0x2c] sm:$0xf0]  ;;  %v2821_v10 = vor.u32 %v3630_v3, %v2820_v2  ;;  %1261 = vmatpush.bf16.msra.mxu1 %v2565_v5  ;;  %v2614_v63 = vld [vmem:[#allocation2 + $0x1b0] sm:$0xf0] }
  0x28   :  { %v2548_v9 = vld [vmem:[#allocation2 + $0x120] sm:$0xf]  ;;  %v3562_v11 = vld [vmem:[#allocation2 + $0x12c] sm:$0xf0]  ;;  %v2421_v16 = vor.u32 %v3530_v8, %v2420_v7  ;;  %1274 = vmatpush.bf16.msra.mxu2 %v2693_v6  ;;  %v2489_v6 = vor.u32 %v3544_v60, %v2486_v61 }
  0x29   :  { %v2676_v12 = vld [vmem:[#allocation2 + $0x220] sm:$0xf]  ;;  %v3594_v13 = vld [vmem:[#allocation2 + $0x22c] sm:$0xf0]  ;;  %v2549_v19 = vor.u32 %v3562_v11, %v2548_v9  ;;  %1287 = vmatpush.bf16.msra.mxu3 %v2821_v10  ;;  %v80_v10 = vld [vmem:[%s4127_s0 + $0x8] sm:$0xff] }
  0x2a   :  { %v2804_v14 = vld [vmem:[#allocation2 + $0x320] sm:$0xf]  ;;  %v3626_v15 = vld [vmem:[#allocation2 + $0x32c] sm:$0xf0]  ;;  %v2677_v20 = vor.u32 %v3594_v13, %v2676_v12  ;;  %1249 = vmatpush.bf16.msra.mxu0 %v2421_v16  ;;  %v82_v11 = vld [vmem:[%s4127_s0 + $0x18] sm:$0xff]  ;;  %v2617_v12 = vor.u32 %v3576_v62, %v2614_v63  ;;  %v3983_v16 = vpack.c.bf16 %v80_v10, %v80_v10 }
  0x2b   :  { %v2404_v17 = vld [vmem:[#allocation2] sm:$0xf]  ;;  %v3526_v18 = vld [vmem:[#allocation2 + $0xc] sm:$0xf0]  ;;  %v2805_v24 = vor.u32 %v3626_v15, %v2804_v14  ;;  %1262 = vmatpush.bf16.msra.mxu1 %v2549_v19  ;;  %v3540_v14 = vld [vmem:[#allocation2 + $0x84] sm:$0xf]  ;;  %v3987_v19 = vpack.c.bf16 %v82_v11, %v82_v11 }
  0x2c   :  { %v2532_v21 = vld [vmem:[#allocation2 + $0x100] sm:$0xf]  ;;  %v3558_v22 = vld [vmem:[#allocation2 + $0x10c] sm:$0xf0]  ;;  %v2405_v31 = vor.u32 %v3526_v18, %v2404_v17  ;;  %1275 = vmatpush.bf16.msra.mxu2 %v2677_v20  ;;  %v2470_v15 = vld [vmem:[#allocation2 + $0x90] sm:$0xf0] }
  0x2d   :  { %v2660_v23 = vld [vmem:[#allocation2 + $0x200] sm:$0xf]  ;;  %v3590_v25 = vld [vmem:[#allocation2 + $0x20c] sm:$0xf0]  ;;  %v2533_v35 = vor.u32 %v3558_v22, %v2532_v21  ;;  %1288 = vmatpush.bf16.msra.mxu3 %v2805_v24  ;;  %v3572_v17 = vld [vmem:[#allocation2 + $0x184] sm:$0xf]  ;;  %v2473_v22 = vor.u32 %v3540_v14, %v2470_v15 }
  0x2e   :  { %v2788_v26 = vld [vmem:[#allocation2 + $0x300] sm:$0xf]  ;;  %v3622_v27 = vld [vmem:[#allocation2 + $0x30c] sm:$0xf0]  ;;  %v2661_v36 = vor.u32 %v3590_v25, %v2660_v23  ;;  %1250 = vmatpush.bf16.msra.mxu0 %v2405_v31  ;;  %v2598_v18 = vld [vmem:[#allocation2 + $0x190] sm:$0xf0] }
  0x2f   :  { %v3028_v28 = vld [vmem:[#allocation2 + $0x4e0] sm:$0xf]  ;;  %v3682_v29 = vld [vmem:[#allocation2 + $0x4ec] sm:$0xf0]  ;;  %v2789_v39 = vor.u32 %v3622_v27, %v2788_v26  ;;  %1263 = vmatpush.bf16.msra.mxu1 %v2533_v35  ;;  %v2601_v26 = vor.u32 %v3572_v17, %v2598_v18  ;;  %v2582_v31 = vld [vmem:[#allocation2 + $0x170] sm:$0xf0] }
  0x30   :  { %v3156_v30 = vld [vmem:[#allocation2 + $0x5e0] sm:$0xf]  ;;  %v3714_v32 = vld [vmem:[#allocation2 + $0x5ec] sm:$0xf0]  ;;  %v3029_v40 = vor.u32 %v3682_v29, %v3028_v28  ;;  %1276 = vmatpush.bf16.msra.mxu2 %v2661_v36  ;;  %v3536_v28 = vld [vmem:[#allocation2 + $0x64] sm:$0xf] }
  0x31   :  { %v3157_v41 = vor.u32 %v3714_v32, %v3156_v30  ;;  %v3012_v43 = vld [vmem:[#allocation2 + $0x4c0] sm:$0xf]  ;;  %v3678_v44 = vld [vmem:[#allocation2 + $0x4cc] sm:$0xf0]  ;;  %1289 = vmatpush.bf16.msra.mxu3 %v2789_v39  ;;  %v2454_v29 = vld [vmem:[#allocation2 + $0x70] sm:$0xf0] }
  0x32   :  { %v3140_v45 = vld [vmem:[#allocation2 + $0x5c0] sm:$0xf]  ;;  %v3710_v47 = vld [vmem:[#allocation2 + $0x5cc] sm:$0xf0]  ;;  %1295 = vmatpush.bf16.msrb.mxu0 %v3029_v40  ;;  %v3013_v52 = vor.u32 %v3678_v44, %v3012_v43  ;;  %1264 = vmatmul.bf16.vlgmr.msra.gmra.mxu1 %v3983_v16  ;;  %v3568_v30 = vld [vmem:[#allocation2 + $0x164] sm:$0xf]  ;;  %v2457_v34 = vor.u32 %v3536_v28, %v2454_v29 }
  0x33   :  { %v2996_v53 = vld [vmem:[#allocation2 + $0x4a0] sm:$0xf]  ;;  %1308 = vmatpush.bf16.msrb.mxu1 %v3157_v41  ;;  %v3141_v54 = vor.u32 %v3710_v47, %v3140_v45  ;;  %v3674_v56 = vld [vmem:[#allocation2 + $0x4ac] sm:$0xf0]  ;;  %v2585_v38 = vor.u32 %v3568_v30, %v2582_v31  ;;  %v3532_v40 = vld [vmem:[#allocation2 + $0x44] sm:$0xf] }
  0x34   :  { %1321 = vmatpush.bf16.msrb.mxu2 %v2521_v42  ;;  %v3124_v57 = vld [vmem:[#allocation2 + $0x5a0] sm:$0xf]  ;;  %v3706_v58 = vld [vmem:[#allocation2 + $0x5ac] sm:$0xf0]  ;;  %v2997_v1 = vor.u32 %v3674_v56, %v2996_v53  ;;  %1290 = vmatmul.bf16.vlgmr.msra.gmra.mxu3 %v3987_v19  ;;  %v2438_v41 = vld [vmem:[#allocation2 + $0x50] sm:$0xf0] }
  0x35   :  { %1334 = vmatpush.bf16.msrb.mxu3 %v2649_v46  ;;  %v2980_v0 = vld [vmem:[#allocation2 + $0x480] sm:$0xf]  ;;  %v3125_v2 = vor.u32 %v3706_v58, %v3124_v57  ;;  %v3670_v3 = vld [vmem:[#allocation2 + $0x48c] sm:$0xf0]  ;;  %v3564_v42 = vld [vmem:[#allocation2 + $0x144] sm:$0xf]  ;;  %v2441_v46 = vor.u32 %v3532_v40, %v2438_v41 }
  0x36   :  { %1296 = vmatpush.bf16.msrb.mxu0 %v3013_v52  ;;  %v79_v4 = vld [vmem:[%s4127_s0] sm:$0xff]  ;;  %v81_v5 = vld [vmem:[%s4127_s0 + $0x10] sm:$0xff]  ;;  %v2981_v20 = vor.u32 %v3670_v3, %v2980_v0 }
  0x37   :  { %1309 = vmatpush.bf16.msrb.mxu1 %v3141_v54  ;;  %v3108_v7 = vld [vmem:[#allocation2 + $0x580] sm:$0xf]  ;;  %v3973_v8 = vpack.c.bf16 %v79_v4, %v79_v4  ;;  %v3975_v9 = vpack.c.bf16 %v81_v5, %v81_v5  ;;  %v3702_v13 = vld [vmem:[#allocation2 + $0x58c] sm:$0xf0]  ;;  %v2566_v43 = vld [vmem:[#allocation2 + $0x150] sm:$0xf0] }
  0x38   :  { %1322 = vmatpush.bf16.msrb.mxu2 %v2505_v55  ;;  %v3109_v21 = vor.u32 %v3702_v13, %v3108_v7  ;;  %v2964_v23 = vld [vmem:[#allocation2 + $0x460] sm:$0xf]  ;;  %v3666_v24 = vld [vmem:[#allocation2 + $0x46c] sm:$0xf0]  ;;  %v2569_v50 = vor.u32 %v3564_v42, %v2566_v43  ;;  %v3528_v52 = vld [vmem:[#allocation2 + $0x24] sm:$0xf] }
  0x39   :  { %1335 = vmatpush.bf16.msrb.mxu3 %v2633_v59  ;;  %1251 = vmatmul.bf16.vlgmr.msra.gmra.mxu0 %v3973_v8  ;;  %v3092_v25 = vld [vmem:[#allocation2 + $0x560] sm:$0xf]  ;;  %v3698_v27 = vld [vmem:[#allocation2 + $0x56c] sm:$0xf0]  ;;  %v2965_v32 = vor.u32 %v3666_v24, %v2964_v23  ;;  %v2422_v53 = vld [vmem:[#allocation2 + $0x30] sm:$0xf0] }
  0x3a   :  { %1277 = vmatmul.bf16.vlgmr.msra.gmra.mxu2 %v3975_v9  ;;  %1297 = vmatpush.bf16.msrb.mxu0 %v2997_v1  ;;  %v3093_v33 = vor.u32 %v3698_v27, %v3092_v25  ;;  %v2948_v35 = vld [vmem:[#allocation2 + $0x440] sm:$0xf]  ;;  %v3662_v36 = vld [vmem:[#allocation2 + $0x44c] sm:$0xf0]  ;;  %v3560_v54 = vld [vmem:[#allocation2 + $0x124] sm:$0xf]  ;;  %v2425_v60 = vor.u32 %v3528_v52, %v2422_v53 }
  0x3b   :  { %1310 = vmatpush.bf16.msrb.mxu1 %v3125_v2  ;;  %v3076_v37 = vld [vmem:[#allocation2 + $0x540] sm:$0xf]  ;;  %v3694_v39 = vld [vmem:[#allocation2 + $0x54c] sm:$0xf0]  ;;  %v2949_v44 = vor.u32 %v3662_v36, %v2948_v35  ;;  %v2550_v55 = vld [vmem:[#allocation2 + $0x130] sm:$0xf0] }
  0x3c   :  { %1323 = vmatpush.bf16.msrb.mxu2 %v2489_v6  ;;  %v3077_v45 = vor.u32 %v3694_v39, %v3076_v37  ;;  %v2932_v47 = vld [vmem:[#allocation2 + $0x420] sm:$0xf]  ;;  %v3658_v48 = vld [vmem:[#allocation2 + $0x42c] sm:$0xf0]  ;;  %v3524_v63 = vld [vmem:[#allocation2 + $0x4] sm:$0xf]  ;;  %v2553_v0 = vor.u32 %v3560_v54, %v2550_v55 }
  0x3d   :  { %1336 = vmatpush.bf16.msrb.mxu3 %v2617_v12  ;;  %v3060_v49 = vld [vmem:[#allocation2 + $0x520] sm:$0xf]  ;;  %v3690_v51 = vld [vmem:[#allocation2 + $0x52c] sm:$0xf0]  ;;  %v2933_v56 = vor.u32 %v3658_v48, %v2932_v47  ;;  %v2406_v1 = vld [vmem:[#allocation2 + $0x10] sm:$0xf0] }
  0x3e   :  { %1298 = vmatpush.bf16.msrb.mxu0 %v2981_v20  ;;  %v2916_v57 = vld [vmem:[#allocation2 + $0x400] sm:$0xf]  ;;  %v3654_v58 = vld [vmem:[#allocation2 + $0x40c] sm:$0xf0]  ;;  %v3061_v59 = vor.u32 %v3690_v51, %v3060_v49  ;;  %v3556_v2 = vld [vmem:[#allocation2 + $0x104] sm:$0xf]  ;;  %v2409_v14 = vor.u32 %v3524_v63, %v2406_v1 }
  0x3f   :  { %1311 = vmatpush.bf16.msrb.mxu1 %v3109_v21  ;;  %v3044_v61 = vld [vmem:[#allocation2 + $0x500] sm:$0xf]  ;;  %v3686_v62 = vld [vmem:[#allocation2 + $0x50c] sm:$0xf0]  ;;  %v2534_v3 = vld [vmem:[#allocation2 + $0x110] sm:$0xf0]  ;;  %v2917_v7 = vor.u32 %v3654_v58, %v2916_v57 }
  0x40   :  { %1324 = vmatpush.bf16.msrb.mxu2 %v2473_v22  ;;  %v3616_v4 = vld [vmem:[#allocation2 + $0x2e4] sm:$0xf]  ;;  %v2774_v5 = vld [vmem:[#allocation2 + $0x2f0] sm:$0xf0]  ;;  %v3045_v13 = vor.u32 %v3686_v62, %v3044_v61  ;;  %v2537_v20 = vor.u32 %v3556_v2, %v2534_v3  ;;  %v84_v22 = vld [vmem:[%s4127_s0 + $0x28] sm:$0xff] }
  0x41   :  { %1337 = vmatpush.bf16.msrb.mxu3 %v2601_v26  ;;  %v3648_v6 = vld [vmem:[#allocation2 + $0x3e4] sm:$0xf]  ;;  %v2902_v10 = vld [vmem:[#allocation2 + $0x3f0] sm:$0xf0]  ;;  %v2777_v21 = vor.u32 %v3616_v4, %v2774_v5  ;;  %v3999_v35 = vpack.c.bf16 %v84_v22, %v84_v22 }
  0x42   :  { %1299 = vmatpush.bf16.msrb.mxu0 %v2965_v32  ;;  %v3680_v11 = vld [vmem:[#allocation2 + $0x4e4] sm:$0xf]  ;;  %v3030_v12 = vld [vmem:[#allocation2 + $0x4f0] sm:$0xf0]  ;;  %v2905_v23 = vor.u32 %v3648_v6, %v2902_v10 }
  0x43   :  { %1312 = vmatpush.bf16.msrb.mxu1 %v3093_v33  ;;  %v3712_v15 = vld [vmem:[#allocation2 + $0x5e4] sm:$0xf]  ;;  %v3158_v17 = vld [vmem:[#allocation2 + $0x5f0] sm:$0xf0]  ;;  %v3033_v24 = vor.u32 %v3680_v11, %v3030_v12 }
  0x44   :  { %1325 = vmatpush.bf16.msrb.mxu2 %v2457_v34  ;;  %v83_v18 = vld [vmem:[%s4127_s0 + $0x20] sm:$0xff]  ;;  %v2758_v26 = vld [vmem:[#allocation2 + $0x2d0] sm:$0xf0]  ;;  %v3161_v28 = vor.u32 %v3712_v15, %v3158_v17 }
  0x45   :  { %1338 = vmatpush.bf16.msrb.mxu3 %v2585_v38  ;;  %v3612_v25 = vld [vmem:[#allocation2 + $0x2c4] sm:$0xf]  ;;  %v2886_v29 = vld [vmem:[#allocation2 + $0x3d0] sm:$0xf0]  ;;  %v3997_v32 = vpack.c.bf16 %v83_v18, %v83_v18 }
  0x46   :  { %1300 = vmatpush.bf16.msrb.mxu0 %v2949_v44  ;;  %v3644_v27 = vld [vmem:[#allocation2 + $0x3c4] sm:$0xf]  ;;  %v3014_v31 = vld [vmem:[#allocation2 + $0x4d0] sm:$0xf0]  ;;  %v2761_v36 = vor.u32 %v3612_v25, %v2758_v26 }
  0x47   :  { %1313 = vmatpush.bf16.msrb.mxu1 %v3077_v45  ;;  %v3676_v30 = vld [vmem:[#allocation2 + $0x4c4] sm:$0xf]  ;;  %v3142_v34 = vld [vmem:[#allocation2 + $0x5d0] sm:$0xf0]  ;;  %v2889_v37 = vor.u32 %v3644_v27, %v2886_v29 }
  0x48   :  { %1326 = vmatpush.bf16.msrb.mxu2 %v2441_v46  ;;  %v3708_v33 = vld [vmem:[#allocation2 + $0x5c4] sm:$0xf]  ;;  %v3017_v38 = vor.u32 %v3676_v30, %v3014_v31  ;;  %v2742_v40 = vld [vmem:[#allocation2 + $0x2b0] sm:$0xf0] }
  0x49   :  { %1339 = vmatpush.bf16.msrb.mxu3 %v2569_v50  ;;  %v3608_v39 = vld [vmem:[#allocation2 + $0x2a4] sm:$0xf]  ;;  %v3145_v42 = vor.u32 %v3708_v33, %v3142_v34  ;;  %v2870_v43 = vld [vmem:[#allocation2 + $0x3b0] sm:$0xf0] }
  0x4a   :  { %1301 = vmatpush.bf16.msrb.mxu0 %v2933_v56  ;;  %v3640_v41 = vld [vmem:[#allocation2 + $0x3a4] sm:$0xf]  ;;  %v2998_v45 = vld [vmem:[#allocation2 + $0x4b0] sm:$0xf0]  ;;  %v2745_v48 = vor.u32 %v3608_v39, %v2742_v40 }
  0x4b   :  { %1314 = vmatpush.bf16.msrb.mxu1 %v3061_v59  ;;  %v3672_v44 = vld [vmem:[#allocation2 + $0x4a4] sm:$0xf]  ;;  %v3126_v47 = vld [vmem:[#allocation2 + $0x5b0] sm:$0xf0]  ;;  %v2873_v49 = vor.u32 %v3640_v41, %v2870_v43 }
  0x4c   :  { %1327 = vmatpush.bf16.msrb.mxu2 %v2425_v60  ;;  %v3704_v46 = vld [vmem:[#allocation2 + $0x5a4] sm:$0xf]  ;;  %v3001_v50 = vor.u32 %v3672_v44, %v2998_v45  ;;  %v2726_v52 = vld [vmem:[#allocation2 + $0x290] sm:$0xf0] }
  0x4d   :  { %1340 = vmatpush.bf16.msrb.mxu3 %v2553_v0  ;;  %v3604_v51 = vld [vmem:[#allocation2 + $0x284] sm:$0xf]  ;;  %v3129_v54 = vor.u32 %v3704_v46, %v3126_v47  ;;  %v2854_v55 = vld [vmem:[#allocation2 + $0x390] sm:$0xf0] }
  0x4e   :  { %1302 = vmatpush.bf16.msrb.mxu0 %v2917_v7  ;;  %v3636_v53 = vld [vmem:[#allocation2 + $0x384] sm:$0xf]  ;;  %v2982_v57 = vld [vmem:[#allocation2 + $0x490] sm:$0xf0]  ;;  %v2729_v60 = vor.u32 %v3604_v51, %v2726_v52  ;;  %v3555_v51 = vld [vmem:[#allocation2 + $0xf4] sm:$0xf0] }
  0x4f   :  { %1315 = vmatpush.bf16.msrb.mxu1 %v3045_v13  ;;  %v3668_v56 = vld [vmem:[#allocation2 + $0x484] sm:$0xf]  ;;  %v3110_v59 = vld [vmem:[#allocation2 + $0x590] sm:$0xf0]  ;;  %v2857_v61 = vor.u32 %v3636_v53, %v2854_v55  ;;  %v2652_v52 = vld [vmem:[#allocation2 + $0x1e8] sm:$0xf] }
  0x50   :  { %1328 = vmatpush.bf16.msrb.mxu2 %v2409_v14  ;;  %v3700_v58 = vld [vmem:[#allocation2 + $0x584] sm:$0xf]  ;;  %v2985_v62 = vor.u32 %v3668_v56, %v2982_v57  ;;  %v2710_v0 = vld [vmem:[#allocation2 + $0x270] sm:$0xf0]  ;;  %v2780_v55 = vld [vmem:[#allocation2 + $0x2e8] sm:$0xf] }
  0x51   :  { %1341 = vmatpush.bf16.msrb.mxu3 %v2537_v20  ;;  %1303 = vmatmul.bf16.vlgmr.msrb.gmra.mxu0 %v3997_v32  ;;  %v3600_v63 = vld [vmem:[#allocation2 + $0x264] sm:$0xf]  ;;  %v3113_v2 = vor.u32 %v3700_v58, %v3110_v59  ;;  %v2838_v3 = vld [vmem:[#allocation2 + $0x370] sm:$0xf0]  ;;  %v3619_v56 = vld [vmem:[#allocation2 + $0x2f4] sm:$0xf0] }
  0x52   :  { %1347 = vmatpush.bf16.msra.mxu0 %v2777_v21  ;;  %1316 = vmatmul.bf16.vlgmr.msrb.gmra.mxu1 %v3999_v35  ;;  %v3632_v1 = vld [vmem:[#allocation2 + $0x364] sm:$0xf]  ;;  %v2966_v5 = vld [vmem:[#allocation2 + $0x470] sm:$0xf0]  ;;  %v2713_v10 = vor.u32 %v3600_v63, %v2710_v0  ;;  %v2908_v59 = vld [vmem:[#allocation2 + $0x3e8] sm:$0xf]  ;;  %v2781_v0 = vor.u32 %v3619_v56, %v2780_v55 }
  0x53   :  { %1360 = vmatpush.bf16.msra.mxu1 %v2905_v23  ;;  %1329 = vmatmul.bf16.vlgmr.msrb.gmra.mxu2 %v3973_v8  ;;  %v3664_v4 = vld [vmem:[#allocation2 + $0x464] sm:$0xf]  ;;  %v3094_v7 = vld [vmem:[#allocation2 + $0x570] sm:$0xf0]  ;;  %v2841_v11 = vor.u32 %v3632_v1, %v2838_v3  ;;  %v2508_v1 = vld [vmem:[#allocation2 + $0xc8] sm:$0xf] }
  0x54   :  { %1373 = vmatpush.bf16.msra.mxu2 %v3033_v24  ;;  %1342 = vmatmul.bf16.vlgmr.msrb.gmra.mxu3 %v3983_v16  ;;  %v3696_v6 = vld [vmem:[#allocation2 + $0x564] sm:$0xf]  ;;  %v2969_v12 = vor.u32 %v3664_v4, %v2966_v5  ;;  %v2694_v14 = vld [vmem:[#allocation2 + $0x250] sm:$0xf0]  ;;  %v2636_v3 = vld [vmem:[#allocation2 + $0x1c8] sm:$0xf] }
  0x55   :  { %1386 = vmatpush.bf16.msra.mxu3 %v3161_v28  ;;  %v3596_v13 = vld [vmem:[#allocation2 + $0x244] sm:$0xf]  ;;  %v3097_v17 = vor.u32 %v3696_v6, %v3094_v7  ;;  %v2822_v18 = vld [vmem:[#allocation2 + $0x350] sm:$0xf0]  ;;  %v3583_v5 = vld [vmem:[#allocation2 + $0x1d4] sm:$0xf0] }
  0x56   :  { %1348 = vmatpush.bf16.msra.mxu0 %v2761_v36  ;;  %v3628_v15 = vld [vmem:[#allocation2 + $0x344] sm:$0xf]  ;;  %v2950_v21 = vld [vmem:[#allocation2 + $0x450] sm:$0xf0]  ;;  %v2697_v24 = vor.u32 %v3596_v13, %v2694_v14  ;;  %v2764_v6 = vld [vmem:[#allocation2 + $0x2c8] sm:$0xf]  ;;  %v2637_v13 = vor.u32 %v3583_v5, %v2636_v3 }
  0x57   :  { %1361 = vmatpush.bf16.msra.mxu1 %v2889_v37  ;;  %v3660_v20 = vld [vmem:[#allocation2 + $0x444] sm:$0xf]  ;;  %v3078_v23 = vld [vmem:[#allocation2 + $0x550] sm:$0xf0]  ;;  %v2825_v27 = vor.u32 %v3628_v15, %v2822_v18  ;;  %v3615_v7 = vld [vmem:[#allocation2 + $0x2d4] sm:$0xf0] }
  0x58   :  { %1374 = vmatpush.bf16.msra.mxu2 %v3017_v38  ;;  %v3692_v22 = vld [vmem:[#allocation2 + $0x544] sm:$0xf]  ;;  %v2678_v26 = vld [vmem:[#allocation2 + $0x230] sm:$0xf0]  ;;  %v2953_v28 = vor.u32 %v3660_v20, %v2950_v21  ;;  %v2765_v14 = vor.u32 %v3615_v7, %v2764_v6  ;;  %v2492_v15 = vld [vmem:[#allocation2 + $0xa8] sm:$0xf] }
  0x59   :  { %1387 = vmatpush.bf16.msra.mxu3 %v3145_v42  ;;  %v3592_v25 = vld [vmem:[#allocation2 + $0x224] sm:$0xf]  ;;  %v2806_v30 = vld [vmem:[#allocation2 + $0x330] sm:$0xf0]  ;;  %v3081_v33 = vor.u32 %v3692_v22, %v3078_v23  ;;  %v2620_v18 = vld [vmem:[#allocation2 + $0x1a8] sm:$0xf] }
  0x5a   :  { %1349 = vmatpush.bf16.msra.mxu0 %v2745_v48  ;;  %v3624_v29 = vld [vmem:[#allocation2 + $0x324] sm:$0xf]  ;;  %v2934_v34 = vld [vmem:[#allocation2 + $0x430] sm:$0xf0]  ;;  %v2681_v40 = vor.u32 %v3592_v25, %v2678_v26  ;;  %v3579_v21 = vld [vmem:[#allocation2 + $0x1b4] sm:$0xf0] }
  0x5b   :  { %1362 = vmatpush.bf16.msra.mxu1 %v2873_v49  ;;  %v3656_v31 = vld [vmem:[#allocation2 + $0x424] sm:$0xf]  ;;  %v3062_v37 = vld [vmem:[#allocation2 + $0x530] sm:$0xf0]  ;;  %v2809_v43 = vor.u32 %v3624_v29, %v2806_v30  ;;  %v2748_v22 = vld [vmem:[#allocation2 + $0x2a8] sm:$0xf] }
  0x5c   :  { %1375 = vmatpush.bf16.msra.mxu2 %v3001_v50  ;;  %v3688_v36 = vld [vmem:[#allocation2 + $0x524] sm:$0xf]  ;;  %v2662_v39 = vld [vmem:[#allocation2 + $0x210] sm:$0xf0]  ;;  %v2937_v44 = vor.u32 %v3656_v31, %v2934_v34  ;;  %v2524_v50 = vld [vmem:[#allocation2 + $0xe8] sm:$0xf] }
  0x5d   :  { %1388 = vmatpush.bf16.msra.mxu3 %v3129_v54  ;;  %v3588_v38 = vld [vmem:[#allocation2 + $0x204] sm:$0xf]  ;;  %v2790_v42 = vld [vmem:[#allocation2 + $0x310] sm:$0xf0]  ;;  %v3065_v48 = vor.u32 %v3688_v36, %v3062_v37  ;;  %v3587_v54 = vld [vmem:[#allocation2 + $0x1f4] sm:$0xf0] }
  0x5e   :  { %1350 = vmatpush.bf16.msra.mxu0 %v2729_v60  ;;  %v3620_v41 = vld [vmem:[#allocation2 + $0x304] sm:$0xf]  ;;  %v2918_v46 = vld [vmem:[#allocation2 + $0x410] sm:$0xf0]  ;;  %v2665_v53 = vor.u32 %v3588_v38, %v2662_v39  ;;  %v3651_v60 = vld [vmem:[#allocation2 + $0x3f4] sm:$0xf0]  ;;  %v2653_v63 = vor.u32 %v3587_v54, %v2652_v52 }
  0x5f   :  { %1363 = vmatpush.bf16.msra.mxu1 %v2857_v61  ;;  %v3652_v45 = vld [vmem:[#allocation2 + $0x404] sm:$0xf]  ;;  %v3046_v49 = vld [vmem:[#allocation2 + $0x510] sm:$0xf0]  ;;  %v2793_v57 = vor.u32 %v3620_v41, %v2790_v42  ;;  %v2909_v4 = vor.u32 %v3651_v60, %v2908_v59  ;;  %v3611_v23 = vld [vmem:[#allocation2 + $0x2b4] sm:$0xf0] }
  0x60   :  { %1376 = vmatpush.bf16.msra.mxu2 %v2985_v62  ;;  %v3684_v47 = vld [vmem:[#allocation2 + $0x504] sm:$0xf]  ;;  %v2921_v58 = vor.u32 %v3652_v45, %v2918_v46  ;;  %v2525_v62 = vor.u32 %v3555_v51, %v2524_v50  ;;  %v3643_v25 = vld [vmem:[#allocation2 + $0x3b4] sm:$0xf0]  ;;  %v2476_v29 = vld [vmem:[#allocation2 + $0x88] sm:$0xf] }
  0x61   :  { %1389 = vmatpush.bf16.msra.mxu3 %v3113_v2  ;;  %v3049_v61 = vor.u32 %v3684_v47, %v3046_v49  ;;  %v3551_v2 = vld [vmem:[#allocation2 + $0xd4] sm:$0xf0]  ;;  %v2604_v31 = vld [vmem:[#allocation2 + $0x188] sm:$0xf] }
  0x62   :  { %1351 = vmatpush.bf16.msra.mxu0 %v2713_v10  ;;  %v2892_v10 = vld [vmem:[#allocation2 + $0x3c8] sm:$0xf]  ;;  %v3543_v30 = vld [vmem:[#allocation2 + $0x94] sm:$0xf0] }
  0x63   :  { %1364 = vmatpush.bf16.msra.mxu1 %v2841_v11  ;;  %v3647_v11 = vld [vmem:[#allocation2 + $0x3d4] sm:$0xf0]  ;;  %v2732_v36 = vld [vmem:[#allocation2 + $0x288] sm:$0xf] }
  0x64   :  { %1377 = vmatpush.bf16.msra.mxu2 %v2969_v12  ;;  %v2509_v12 = vor.u32 %v3551_v2, %v2508_v1  ;;  %v2893_v20 = vor.u32 %v3647_v11, %v2892_v10  ;;  %v3575_v34 = vld [vmem:[#allocation2 + $0x194] sm:$0xf0]  ;;  %v2860_v38 = vld [vmem:[#allocation2 + $0x388] sm:$0xf] }
  0x65   :  { %1390 = vmatpush.bf16.msra.mxu3 %v3097_v17  ;;  %v3547_v17 = vld [vmem:[#allocation2 + $0xb4] sm:$0xf0]  ;;  %v2605_v41 = vor.u32 %v3575_v34, %v2604_v31  ;;  %v2588_v45 = vld [vmem:[#allocation2 + $0x168] sm:$0xf]  ;;  %v3553_v34 = vld [vmem:[#allocation2 + $0xec] sm:$0xf] }
  0x66   :  { %1352 = vmatpush.bf16.msra.mxu0 %v2697_v24  ;;  %v2876_v24 = vld [vmem:[#allocation2 + $0x3a8] sm:$0xf]  ;;  %v2493_v26 = vor.u32 %v3547_v17, %v2492_v15  ;;  %v3607_v37 = vld [vmem:[#allocation2 + $0x294] sm:$0xf0] }
  0x67   :  { %1365 = vmatpush.bf16.msra.mxu1 %v2825_v27  ;;  %v2621_v27 = vor.u32 %v3579_v21, %v2620_v18  ;;  %v3639_v39 = vld [vmem:[#allocation2 + $0x394] sm:$0xf0]  ;;  %v2733_v42 = vor.u32 %v3607_v37, %v2732_v36  ;;  %v2844_v50 = vld [vmem:[#allocation2 + $0x368] sm:$0xf]  ;;  %v2526_v36 = vld [vmem:[#allocation2 + $0xf8] sm:$0xf0] }
  0x68   :  { %1378 = vmatpush.bf16.msra.mxu2 %v2953_v28  ;;  %v2749_v28 = vor.u32 %v3611_v23, %v2748_v22  ;;  %v2861_v46 = vor.u32 %v3639_v39, %v2860_v38  ;;  %v3571_v47 = vld [vmem:[#allocation2 + $0x174] sm:$0xf0]  ;;  %v2444_v55 = vld [vmem:[#allocation2 + $0x48] sm:$0xf]  ;;  %v3585_v39 = vld [vmem:[#allocation2 + $0x1ec] sm:$0xf] }
  0x69   :  { %1391 = vmatpush.bf16.msra.mxu3 %v3081_v33  ;;  %v2877_v33 = vor.u32 %v3643_v25, %v2876_v24  ;;  %v3603_v49 = vld [vmem:[#allocation2 + $0x274] sm:$0xf0]  ;;  %v2700_v60 = vld [vmem:[#allocation2 + $0x248] sm:$0xf] }
  0x6a   :  { %1353 = vmatpush.bf16.msra.mxu0 %v2681_v40  ;;  %v2477_v40 = vor.u32 %v3543_v30, %v2476_v29  ;;  %v3635_v51 = vld [vmem:[#allocation2 + $0x374] sm:$0xf0]  ;;  %v2428_v3 = vld [vmem:[#allocation2 + $0x28] sm:$0xf] }
  0x6b   :  { %1366 = vmatpush.bf16.msra.mxu1 %v2809_v43  ;;  %v2460_v43 = vld [vmem:[#allocation2 + $0x68] sm:$0xf]  ;;  %v3535_v56 = vld [vmem:[#allocation2 + $0x54] sm:$0xf0] }
  0x6c   :  { %1379 = vmatpush.bf16.msra.mxu2 %v2937_v44  ;;  %v3539_v44 = vld [vmem:[#allocation2 + $0x74] sm:$0xf0]  ;;  %v2556_v5 = vld [vmem:[#allocation2 + $0x128] sm:$0xf] }
  0x6d   :  { %1392 = vmatpush.bf16.msra.mxu3 %v3065_v48  ;;  %v2716_v48 = vld [vmem:[#allocation2 + $0x268] sm:$0xf]  ;;  %v2461_v52 = vor.u32 %v3539_v44, %v2460_v43  ;;  %v3567_v59 = vld [vmem:[#allocation2 + $0x154] sm:$0xf0]  ;;  %v2529_v44 = vor.u32 %v3553_v34, %v2526_v36 }
  0x6e   :  { %1354 = vmatpush.bf16.msra.mxu0 %v2665_v53  ;;  %v2589_v53 = vor.u32 %v3571_v47, %v2588_v45  ;;  %v2717_v54 = vor.u32 %v3603_v49, %v2716_v48  ;;  %v3563_v7 = vld [vmem:[#allocation2 + $0x134] sm:$0xf0]  ;;  %v2684_v10 = vld [vmem:[#allocation2 + $0x228] sm:$0xf] }
  0x6f   :  { %1367 = vmatpush.bf16.msra.mxu1 %v2793_v57  ;;  %v2572_v57 = vld [vmem:[#allocation2 + $0x148] sm:$0xf]  ;;  %v3595_v11 = vld [vmem:[#allocation2 + $0x234] sm:$0xf0]  ;;  %v2557_v18 = vor.u32 %v3563_v7, %v2556_v5 }
  0x70   :  { %1380 = vmatpush.bf16.msra.mxu2 %v2921_v58  ;;  %v2845_v58 = vor.u32 %v3635_v51, %v2844_v50  ;;  %v2573_v1 = vor.u32 %v3567_v59, %v2572_v57  ;;  %v2412_v15 = vld [vmem:[#allocation2 + $0x8] sm:$0xf]  ;;  %v3527_v17 = vld [vmem:[#allocation2 + $0x14] sm:$0xf0]  ;;  %v3549_v50 = vld [vmem:[#allocation2 + $0xcc] sm:$0xf] }
  0x71   :  { %1393 = vmatpush.bf16.msra.mxu3 %v3049_v61  ;;  %1355 = vmatmul.bf16.vlgmr.msra.gmra.mxu0 %v3975_v9  ;;  %v3599_v61 = vld [vmem:[#allocation2 + $0x254] sm:$0xf0]  ;;  %v2540_v21 = vld [vmem:[#allocation2 + $0x108] sm:$0xf]  ;;  %v2413_v31 = vor.u32 %v3527_v17, %v2412_v15  ;;  %v2510_v51 = vld [vmem:[#allocation2 + $0xd8] sm:$0xf0] }
  0x72   :  { %1399 = vmatpush.bf16.msrb.mxu0 %v2525_v62  ;;  %1368 = vmatmul.bf16.vlgmr.msra.gmra.mxu1 %v3987_v19  ;;  %v2828_v62 = vld [vmem:[#allocation2 + $0x348] sm:$0xf]  ;;  %v2701_v2 = vor.u32 %v3599_v61, %v2700_v60  ;;  %v3559_v22 = vld [vmem:[#allocation2 + $0x114] sm:$0xf0]  ;;  %v2606_v15 = vld [vmem:[#allocation2 + $0x198] sm:$0xf0] }
  0x73   :  { %1412 = vmatpush.bf16.msrb.mxu1 %v2653_v63  ;;  %1381 = vmatmul.bf16.vlgmr.msra.gmra.mxu2 %v3997_v32  ;;  %v3631_v63 = vld [vmem:[#allocation2 + $0x354] sm:$0xf0]  ;;  %v2668_v23 = vld [vmem:[#allocation2 + $0x208] sm:$0xf]  ;;  %v2541_v37 = vor.u32 %v3559_v22, %v2540_v21 }
  0x74   :  { %1425 = vmatpush.bf16.msrb.mxu2 %v2781_v0  ;;  %1394 = vmatmul.bf16.vlgmr.msra.gmra.mxu3 %v3999_v35  ;;  %v2445_v0 = vor.u32 %v3535_v56, %v2444_v55  ;;  %v2829_v6 = vor.u32 %v3631_v63, %v2828_v62  ;;  %v3591_v25 = vld [vmem:[#allocation2 + $0x214] sm:$0xf0]  ;;  %v3164_v30 = vld [vmem:[#allocation2 + $0x5e8] sm:$0xf]  ;;  %v2513_v56 = vor.u32 %v3549_v50, %v2510_v51  ;;  %v3545_v62 = vld [vmem:[#allocation2 + $0xac] sm:$0xf] }
  0x75   :  { %1438 = vmatpush.bf16.msrb.mxu3 %v2909_v4  ;;  %v3531_v4 = vld [vmem:[#allocation2 + $0x34] sm:$0xf0]  ;;  %v2669_v38 = vor.u32 %v3591_v25, %v2668_v23  ;;  %v3020_v45 = vld [vmem:[#allocation2 + $0x4c8] sm:$0xf]  ;;  %v2494_v63 = vld [vmem:[#allocation2 + $0xb8] sm:$0xf0] }
  0x76   :  { %1400 = vmatpush.bf16.msrb.mxu0 %v2509_v12  ;;  %v2812_v12 = vld [vmem:[#allocation2 + $0x328] sm:$0xf]  ;;  %v3683_v29 = vld [vmem:[#allocation2 + $0x4f4] sm:$0xf0] }
  0x77   :  { %1413 = vmatpush.bf16.msrb.mxu1 %v2637_v13  ;;  %v3627_v13 = vld [vmem:[#allocation2 + $0x334] sm:$0xf0]  ;;  %v3148_v47 = vld [vmem:[#allocation2 + $0x5c8] sm:$0xf] }
  0x78   :  { %1426 = vmatpush.bf16.msrb.mxu2 %v2765_v14  ;;  %v2429_v14 = vor.u32 %v3531_v4, %v2428_v3  ;;  %v2813_v24 = vor.u32 %v3627_v13, %v2812_v12  ;;  %v3711_v49 = vld [vmem:[#allocation2 + $0x5d4] sm:$0xf0]  ;;  %v3004_v57 = vld [vmem:[#allocation2 + $0x4a8] sm:$0xf]  ;;  %v2497_v4 = vor.u32 %v3545_v62, %v2494_v63  ;;  %v3541_v12 = vld [vmem:[#allocation2 + $0x8c] sm:$0xf] }
  0x79   :  { %1439 = vmatpush.bf16.msrb.mxu3 %v2893_v20  ;;  %v2685_v20 = vor.u32 %v3595_v11, %v2684_v10  ;;  %v3149_v55 = vor.u32 %v3711_v49, %v3148_v47  ;;  %v3132_v59 = vld [vmem:[#allocation2 + $0x5a8] sm:$0xf]  ;;  %v3707_v61 = vld [vmem:[#allocation2 + $0x5b4] sm:$0xf0]  ;;  %v2478_v13 = vld [vmem:[#allocation2 + $0x98] sm:$0xf0] }
  0x7a   :  { %1401 = vmatpush.bf16.msrb.mxu0 %v2493_v26  ;;  %v2796_v26 = vld [vmem:[#allocation2 + $0x308] sm:$0xf]  ;;  %v3133_v3 = vor.u32 %v3707_v61, %v3132_v59  ;;  %v3703_v11 = vld [vmem:[#allocation2 + $0x594] sm:$0xf0]  ;;  %v3525_v63 = vld [vmem:[#allocation2 + $0xc] sm:$0xf] }
  0x7b   :  { %1414 = vmatpush.bf16.msrb.mxu1 %v2621_v27  ;;  %v3623_v27 = vld [vmem:[#allocation2 + $0x314] sm:$0xf0]  ;;  %v2988_v5 = vld [vmem:[#allocation2 + $0x488] sm:$0xf] }
  0x7c   :  { %1427 = vmatpush.bf16.msrb.mxu2 %v2749_v28  ;;  %v3036_v28 = vld [vmem:[#allocation2 + $0x4e8] sm:$0xf]  ;;  %v3667_v22 = vld [vmem:[#allocation2 + $0x474] sm:$0xf0] }
  0x7d   :  { %1440 = vmatpush.bf16.msrb.mxu3 %v2877_v33  ;;  %v3715_v33 = vld [vmem:[#allocation2 + $0x5f4] sm:$0xf0]  ;;  %v3116_v7 = vld [vmem:[#allocation2 + $0x588] sm:$0xf] }
  0x7e   :  { %1402 = vmatpush.bf16.msrb.mxu0 %v2477_v40  ;;  %v2654_v40 = vld [vmem:[#allocation2 + $0x1f8] sm:$0xf0]  ;;  %v3165_v43 = vor.u32 %v3715_v33, %v3164_v30  ;;  %v2972_v21 = vld [vmem:[#allocation2 + $0x468] sm:$0xf]  ;;  %v3699_v25 = vld [vmem:[#allocation2 + $0x574] sm:$0xf0] }
  0x7f   :  { %1415 = vmatpush.bf16.msrb.mxu1 %v2605_v41  ;;  %v2797_v41 = vor.u32 %v3623_v27, %v2796_v26  ;;  %v2657_v48 = vor.u32 %v3585_v39, %v2654_v40  ;;  %v3100_v23 = vld [vmem:[#allocation2 + $0x568] sm:$0xf]  ;;  %v3537_v26 = vld [vmem:[#allocation2 + $0x6c] sm:$0xf]  ;;  %v2462_v27 = vld [vmem:[#allocation2 + $0x78] sm:$0xf0]  ;;  %v2973_v30 = vor.u32 %v3667_v22, %v2972_v21 }
  0x80   :  { %1428 = vmatpush.bf16.msrb.mxu2 %v2733_v42  ;;  %v3037_v42 = vor.u32 %v3683_v29, %v3036_v28  ;;  %v3569_v28 = vld [vmem:[#allocation2 + $0x16c] sm:$0xf]  ;;  %v2590_v29 = vld [vmem:[#allocation2 + $0x178] sm:$0xf0]  ;;  %v2465_v33 = vor.u32 %v3537_v26, %v2462_v27  ;;  %v2956_v34 = vld [vmem:[#allocation2 + $0x448] sm:$0xf] }
  0x81   :  { %1441 = vmatpush.bf16.msrb.mxu3 %v2861_v46  ;;  %v3679_v46 = vld [vmem:[#allocation2 + $0x4d4] sm:$0xf0]  ;;  %v3533_v40 = vld [vmem:[#allocation2 + $0x4c] sm:$0xf]  ;;  %v2940_v47 = vld [vmem:[#allocation2 + $0x428] sm:$0xf] }
  0x82   :  { %1403 = vmatpush.bf16.msrb.mxu0 %v2461_v52  ;;  %v3581_v52 = vld [vmem:[#allocation2 + $0x1cc] sm:$0xf]  ;;  %v3663_v36 = vld [vmem:[#allocation2 + $0x454] sm:$0xf0]  ;;  %v3068_v49 = vld [vmem:[#allocation2 + $0x528] sm:$0xf] }
  0x83   :  { %1416 = vmatpush.bf16.msrb.mxu1 %v2589_v53  ;;  %v2638_v53 = vld [vmem:[#allocation2 + $0x1d8] sm:$0xf0]  ;;  %v3695_v39 = vld [vmem:[#allocation2 + $0x554] sm:$0xf0]  ;;  %v3052_v61 = vld [vmem:[#allocation2 + $0x508] sm:$0xf] }
  0x84   :  { %1429 = vmatpush.bf16.msrb.mxu2 %v2717_v54  ;;  %v3021_v54 = vor.u32 %v3679_v46, %v3020_v45  ;;  %v2641_v60 = vor.u32 %v3581_v52, %v2638_v53  ;;  %v3691_v51 = vld [vmem:[#allocation2 + $0x534] sm:$0xf0]  ;;  %v3529_v52 = vld [vmem:[#allocation2 + $0x2c] sm:$0xf]  ;;  %v2430_v53 = vld [vmem:[#allocation2 + $0x38] sm:$0xf0] }
  0x85   :  { %1442 = vmatpush.bf16.msrb.mxu3 %v2845_v58  ;;  %v3675_v58 = vld [vmem:[#allocation2 + $0x4b4] sm:$0xf0]  ;;  %v3069_v59 = vor.u32 %v3691_v51, %v3068_v49  ;;  %v2894_v27 = vld [vmem:[#allocation2 + $0x3d8] sm:$0xf0]  ;;  %v3605_v49 = vld [vmem:[#allocation2 + $0x28c] sm:$0xf] }
  0x86   :  { %1404 = vmatpush.bf16.msrb.mxu0 %v2445_v0  ;;  %v3577_v0 = vld [vmem:[#allocation2 + $0x1ac] sm:$0xf]  ;;  %v3687_v62 = vld [vmem:[#allocation2 + $0x514] sm:$0xf0] }
  0x87   :  { %1417 = vmatpush.bf16.msrb.mxu1 %v2573_v1  ;;  %v2622_v1 = vld [vmem:[#allocation2 + $0x1b8] sm:$0xf0]  ;;  %v3637_v51 = vld [vmem:[#allocation2 + $0x38c] sm:$0xf] }
  0x88   :  { %1430 = vmatpush.bf16.msrb.mxu2 %v2701_v2  ;;  %v3005_v2 = vor.u32 %v3675_v58, %v3004_v57  ;;  %v2625_v10 = vor.u32 %v3577_v0, %v2622_v1  ;;  %v2924_v57 = vld [vmem:[#allocation2 + $0x408] sm:$0xf]  ;;  %v3655_v58 = vld [vmem:[#allocation2 + $0x414] sm:$0xf0]  ;;  %v2414_v1 = vld [vmem:[#allocation2 + $0x18] sm:$0xf0] }
  0x89   :  { %1443 = vmatpush.bf16.msrb.mxu3 %v2829_v6  ;;  %v3671_v6 = vld [vmem:[#allocation2 + $0x494] sm:$0xf0] }
  0x8a   :  { %1405 = vmatpush.bf16.msrb.mxu0 %v2429_v14  ;;  %v3573_v14 = vld [vmem:[#allocation2 + $0x18c] sm:$0xf]  ;;  %v2989_v17 = vor.u32 %v3671_v6, %v2988_v5  ;;  %v2782_v5 = vld [vmem:[#allocation2 + $0x2f8] sm:$0xf0] }
  0x8b   :  { %1418 = vmatpush.bf16.msrb.mxu1 %v2557_v18  ;;  %v3117_v18 = vor.u32 %v3703_v11, %v3116_v7  ;;  %v3649_v6 = vld [vmem:[#allocation2 + $0x3ec] sm:$0xf]  ;;  %v2925_v7 = vor.u32 %v3655_v58, %v2924_v57 }
  0x8c   :  { %1431 = vmatpush.bf16.msrb.mxu2 %v2685_v20  ;;  %v2481_v20 = vor.u32 %v3541_v12, %v2478_v13  ;;  %v3681_v11 = vld [vmem:[#allocation2 + $0x4ec] sm:$0xf]  ;;  %v3038_v12 = vld [vmem:[#allocation2 + $0x4f8] sm:$0xf0]  ;;  %v3053_v13 = vor.u32 %v3687_v62, %v3052_v61 }
  0x8d   :  { %1444 = vmatpush.bf16.msrb.mxu3 %v2813_v24  ;;  %v2609_v24 = vor.u32 %v3573_v14, %v2606_v15  ;;  %v2417_v14 = vor.u32 %v3525_v63, %v2414_v1  ;;  %v3713_v15 = vld [vmem:[#allocation2 + $0x5ec] sm:$0xf]  ;;  %v3041_v22 = vor.u32 %v3681_v11, %v3038_v12  ;;  %v2846_v63 = vld [vmem:[#allocation2 + $0x378] sm:$0xf0] }
  0x8e   :  { %1406 = vmatpush.bf16.msrb.mxu0 %v2413_v31  ;;  %v3101_v31 = vor.u32 %v3699_v25, %v3100_v23  ;;  %v3613_v23 = vld [vmem:[#allocation2 + $0x2cc] sm:$0xf]  ;;  %v2974_v1 = vld [vmem:[#allocation2 + $0x478] sm:$0xf0] }
  0x8f   :  { %1419 = vmatpush.bf16.msrb.mxu1 %v2541_v37  ;;  %v3084_v37 = vld [vmem:[#allocation2 + $0x548] sm:$0xf]  ;;  %v3645_v25 = vld [vmem:[#allocation2 + $0x3cc] sm:$0xf]  ;;  %v2702_v11 = vld [vmem:[#allocation2 + $0x258] sm:$0xf0] }
  0x90   :  { %1432 = vmatpush.bf16.msrb.mxu2 %v2669_v38  ;;  %v2593_v38 = vor.u32 %v3569_v28, %v2590_v29  ;;  %v3085_v45 = vor.u32 %v3695_v39, %v3084_v37  ;;  %v3677_v28 = vld [vmem:[#allocation2 + $0x4cc] sm:$0xf]  ;;  %v3022_v29 = vld [vmem:[#allocation2 + $0x4d8] sm:$0xf0] }
  0x91   :  { %1445 = vmatpush.bf16.msrb.mxu3 %v2797_v41  ;;  %1407 = vmatmul.bf16.vlgmr.msrb.gmra.mxu0 %v3973_v8  ;;  %v2446_v41 = vld [vmem:[#allocation2 + $0x58] sm:$0xf0]  ;;  %v3609_v37 = vld [vmem:[#allocation2 + $0x2ac] sm:$0xf] }
  0x92   :  { %1451 = vmatpush.bf16.msra.mxu0 %v3037_v42  ;;  %1420 = vmatmul.bf16.vlgmr.msrb.gmra.mxu1 %v3983_v16  ;;  %v3565_v42 = vld [vmem:[#allocation2 + $0x14c] sm:$0xf]  ;;  %v2449_v46 = vor.u32 %v3533_v40, %v2446_v41  ;;  %v2878_v41 = vld [vmem:[#allocation2 + $0x3b8] sm:$0xf0] }
  0x93   :  { %1464 = vmatpush.bf16.msra.mxu1 %v3165_v43  ;;  %1433 = vmatmul.bf16.vlgmr.msrb.gmra.mxu2 %v3975_v9  ;;  %v2574_v43 = vld [vmem:[#allocation2 + $0x158] sm:$0xf0]  ;;  %v3641_v39 = vld [vmem:[#allocation2 + $0x3ac] sm:$0xf] }
  0x94   :  { %1477 = vmatpush.bf16.msra.mxu2 %v2529_v44  ;;  %1446 = vmatmul.bf16.vlgmr.msrb.gmra.mxu3 %v3987_v19  ;;  %v2957_v44 = vor.u32 %v3663_v36, %v2956_v34  ;;  %v2577_v50 = vor.u32 %v3565_v42, %v2574_v43  ;;  %v2897_v34 = vor.u32 %v3645_v25, %v2894_v27  ;;  %v3673_v42 = vld [vmem:[#allocation2 + $0x4ac] sm:$0xf]  ;;  %v3006_v43 = vld [vmem:[#allocation2 + $0x4b8] sm:$0xf0] }
  0x95   :  { %1490 = vmatpush.bf16.msra.mxu3 %v2657_v48  ;;  %v3659_v48 = vld [vmem:[#allocation2 + $0x434] sm:$0xf0]  ;;  %v3025_v36 = vor.u32 %v3677_v28, %v3022_v29  ;;  %v3633_v61 = vld [vmem:[#allocation2 + $0x36c] sm:$0xf]  ;;  %v2814_v29 = vld [vmem:[#allocation2 + $0x338] sm:$0xf0] }
  0x96   :  { %1452 = vmatpush.bf16.msra.mxu0 %v3021_v54  ;;  %v3561_v54 = vld [vmem:[#allocation2 + $0x12c] sm:$0xf] }
  0x97   :  { %1465 = vmatpush.bf16.msra.mxu1 %v3149_v55  ;;  %v2558_v55 = vld [vmem:[#allocation2 + $0x138] sm:$0xf0]  ;;  %v3629_v12 = vld [vmem:[#allocation2 + $0x34c] sm:$0xf] }
  0x98   :  { %1478 = vmatpush.bf16.msra.mxu2 %v2513_v56  ;;  %v2941_v56 = vor.u32 %v3659_v48, %v2940_v47  ;;  %v2561_v0 = vor.u32 %v3561_v54, %v2558_v55  ;;  %v2881_v47 = vor.u32 %v3641_v39, %v2878_v41  ;;  %v3009_v48 = vor.u32 %v3673_v42, %v3006_v43  ;;  %v3669_v54 = vld [vmem:[#allocation2 + $0x48c] sm:$0xf]  ;;  %v2990_v55 = vld [vmem:[#allocation2 + $0x498] sm:$0xf0] }
  0x99   :  { %1491 = vmatpush.bf16.msra.mxu3 %v2641_v60  ;;  %v2433_v60 = vor.u32 %v3529_v52, %v2430_v53  ;;  %v2862_v53 = vld [vmem:[#allocation2 + $0x398] sm:$0xf0]  ;;  %v3593_v25 = vld [vmem:[#allocation2 + $0x22c] sm:$0xf] }
  0x9a   :  { %1453 = vmatpush.bf16.msra.mxu0 %v3005_v2  ;;  %v3557_v2 = vld [vmem:[#allocation2 + $0x10c] sm:$0xf]  ;;  %v2865_v58 = vor.u32 %v3637_v51, %v2862_v53  ;;  %v2670_v42 = vld [vmem:[#allocation2 + $0x218] sm:$0xf0]  ;;  %v3731_v53 = vld [vmem:[#allocation4 + $0x74] sm:$0xf0] }
  0x9b   :  { %1466 = vmatpush.bf16.msra.mxu1 %v3133_v3  ;;  %v2542_v3 = vld [vmem:[#allocation2 + $0x118] sm:$0xf0]  ;;  %v3625_v27 = vld [vmem:[#allocation2 + $0x32c] sm:$0xf] }
  0x9c   :  { %1479 = vmatpush.bf16.msra.mxu2 %v2497_v4  ;;  %v3617_v4 = vld [vmem:[#allocation2 + $0x2ec] sm:$0xf]  ;;  %v3054_v51 = vld [vmem:[#allocation2 + $0x518] sm:$0xf0] }
  0x9d   :  { %1492 = vmatpush.bf16.msra.mxu3 %v2625_v10  ;;  %v2910_v10 = vld [vmem:[#allocation2 + $0x3f8] sm:$0xf0]  ;;  %v3621_v43 = vld [vmem:[#allocation2 + $0x30c] sm:$0xf] }
  0x9e   :  { %1454 = vmatpush.bf16.msra.mxu0 %v2989_v17  ;;  %v3166_v17 = vld [vmem:[#allocation2 + $0x5f8] sm:$0xf0]  ;;  %v2913_v21 = vor.u32 %v3649_v6, %v2910_v10  ;;  %v2849_v6 = vor.u32 %v3633_v61, %v2846_v63  ;;  %v3597_v10 = vld [vmem:[#allocation2 + $0x24c] sm:$0xf]  ;;  %v3221_v61 = vld [vmem:[#allocation4 + $0x60] sm:$0xf] }
  0x9f   :  { %1467 = vmatpush.bf16.msra.mxu1 %v3117_v18  ;;  %v2545_v18 = vor.u32 %v3557_v2, %v2542_v3  ;;  %v3169_v26 = vor.u32 %v3713_v15, %v3166_v17  ;;  %v3697_v2 = vld [vmem:[#allocation2 + $0x56c] sm:$0xf]  ;;  %v3102_v3 = vld [vmem:[#allocation2 + $0x578] sm:$0xf0] }
  0xa0   :  { %1480 = vmatpush.bf16.msra.mxu2 %v2481_v20  ;;  %v2785_v20 = vor.u32 %v3617_v4, %v2782_v5  ;;  %v2830_v15 = vld [vmem:[#allocation2 + $0x358] sm:$0xf0]  ;;  %v3661_v17 = vld [vmem:[#allocation2 + $0x44c] sm:$0xf] }
  0xa1   :  { %1493 = vmatpush.bf16.msra.mxu3 %v2609_v24  ;;  %v2766_v24 = vld [vmem:[#allocation2 + $0x2d8] sm:$0xf0] }
  0xa2   :  { %1455 = vmatpush.bf16.msra.mxu0 %v2973_v30  ;;  %v3709_v30 = vld [vmem:[#allocation2 + $0x5cc] sm:$0xf] }
  0xa3   :  { %1468 = vmatpush.bf16.msra.mxu1 %v3101_v31  ;;  %v3150_v31 = vld [vmem:[#allocation2 + $0x5d8] sm:$0xf0] }
  0xa4   :  { %1481 = vmatpush.bf16.msra.mxu2 %v2465_v33  ;;  %v2769_v33 = vor.u32 %v3613_v23, %v2766_v24  ;;  %v3153_v40 = vor.u32 %v3709_v30, %v3150_v31  ;;  %v2833_v23 = vor.u32 %v3629_v12, %v2830_v15  ;;  %v3657_v30 = vld [vmem:[#allocation2 + $0x42c] sm:$0xf]  ;;  %v2942_v31 = vld [vmem:[#allocation2 + $0x438] sm:$0xf0]  ;;  %v3725_v15 = vld [vmem:[#allocation4 + $0x44] sm:$0xf0] }
  0xa5   :  { %1494 = vmatpush.bf16.msra.mxu3 %v2593_v38  ;;  %v2750_v38 = vld [vmem:[#allocation2 + $0x2b8] sm:$0xf0]  ;;  %v2945_v41 = vor.u32 %v3657_v30, %v2942_v31  ;;  %v3721_v30 = vld [vmem:[#allocation4 + $0x24] sm:$0xf0] }
  0xa6   :  { %1456 = vmatpush.bf16.msra.mxu0 %v2957_v44  ;;  %v3705_v44 = vld [vmem:[#allocation2 + $0x5ac] sm:$0xf] }
  0xa7   :  { %1469 = vmatpush.bf16.msra.mxu1 %v3085_v45  ;;  %v3134_v45 = vld [vmem:[#allocation2 + $0x5b8] sm:$0xf0] }
  0xa8   :  { %1482 = vmatpush.bf16.msra.mxu2 %v2449_v46  ;;  %v2753_v46 = vor.u32 %v3609_v37, %v2750_v38  ;;  %v3137_v52 = vor.u32 %v3705_v44, %v3134_v45  ;;  %v3589_v38 = vld [vmem:[#allocation2 + $0x20c] sm:$0xf]  ;;  %v2798_v44 = vld [vmem:[#allocation2 + $0x318] sm:$0xf0] }
  0xa9   :  { %1495 = vmatpush.bf16.msra.mxu3 %v2577_v50  ;;  %v2734_v50 = vld [vmem:[#allocation2 + $0x298] sm:$0xf0] }
  0xaa   :  { %1457 = vmatpush.bf16.msra.mxu0 %v2941_v56  ;;  %v3701_v56 = vld [vmem:[#allocation2 + $0x58c] sm:$0xf]  ;;  %v2737_v57 = vor.u32 %v3605_v49, %v2734_v50 }
  0xab   :  { %1470 = vmatpush.bf16.msra.mxu1 %v3069_v59  ;;  %v3601_v59 = vld [vmem:[#allocation2 + $0x26c] sm:$0xf] }
  0xac   :  { %1483 = vmatpush.bf16.msra.mxu2 %v2433_v60  ;;  %v2718_v60 = vld [vmem:[#allocation2 + $0x278] sm:$0xf0]  ;;  %v3685_v49 = vld [vmem:[#allocation2 + $0x50c] sm:$0xf] }
  0xad   :  { %1496 = vmatpush.bf16.msra.mxu3 %v2561_v0  ;;  %v3665_v0 = vld [vmem:[#allocation2 + $0x46c] sm:$0xf]  ;;  %v2721_v4 = vor.u32 %v3601_v59, %v2718_v60 }
  0xae   :  { %1458 = vmatpush.bf16.msra.mxu0 %v2925_v7  ;;  %v2977_v7 = vor.u32 %v3665_v0, %v2974_v1  ;;  %v3285_v0 = vld [vmem:[#allocation4 + $0xe0] sm:$0xf]  ;;  %v3745_v1 = vld [vmem:[#allocation4 + $0xe4] sm:$0xf0] }
  0xaf   :  { %1471 = vmatpush.bf16.msra.mxu1 %v3053_v13  ;;  %v1265_v13 = vpop.f32.mrf.mxu1 }
  0xb0   :  { %1484 = vmatpush.bf16.msra.mxu2 %v2417_v14  ;;  %v3105_v14 = vor.u32 %v3697_v2, %v3102_v3 }
  0xb1   :  { %1497 = vmatpush.bf16.msra.mxu3 %v2545_v18  ;;  %1459 = vmatmul.bf16.vlgmr.msra.gmra.mxu0 %v3997_v32  ;;  %v2958_v18 = vld [vmem:[#allocation2 + $0x458] sm:$0xf0] }
  0xb2   :  { %1503 = vmatpush.bf16.msrb.mxu0 %v2785_v20  ;;  %1472 = vmatmul.bf16.vlgmr.msra.gmra.mxu1 %v3999_v35  ;;  %v3693_v20 = vld [vmem:[#allocation2 + $0x54c] sm:$0xf]  ;;  %v2961_v24 = vor.u32 %v3661_v17, %v2958_v18  ;;  %v3741_v18 = vld [vmem:[#allocation4 + $0xc4] sm:$0xf0] }
  0xb3   :  { %1516 = vmatpush.bf16.msrb.mxu1 %v2913_v21  ;;  %1485 = vmatmul.bf16.vlgmr.msra.gmra.mxu2 %v3973_v8  ;;  %v3118_v8 = vld [vmem:[#allocation2 + $0x598] sm:$0xf0] }
  0xb4   :  { %1529 = vmatpush.bf16.msrb.mxu2 %v3041_v22  ;;  %1498 = vmatmul.bf16.vlgmr.msra.gmra.mxu3 %v3983_v16  ;;  %v2993_v16 = vor.u32 %v3669_v54, %v2990_v55  ;;  %v3121_v62 = vor.u32 %v3701_v56, %v3118_v8  ;;  %v3086_v21 = vld [vmem:[#allocation2 + $0x558] sm:$0xf0]  ;;  %v2705_v22 = vor.u32 %v3597_v10, %v2702_v11  ;;  %v3293_v55 = vld [vmem:[#allocation4 + $0xf0] sm:$0xf]  ;;  %v3747_v56 = vld [vmem:[#allocation4 + $0xf4] sm:$0xf0] }
  0xb5   :  { %1542 = vmatpush.bf16.msrb.mxu3 %v3169_v26  ;;  %v2686_v26 = vld [vmem:[#allocation2 + $0x238] sm:$0xf0]  ;;  %v3089_v28 = vor.u32 %v3693_v20, %v3086_v21  ;;  %v2673_v54 = vor.u32 %v3589_v38, %v2670_v42  ;;  %v2801_v8 = vor.u32 %v3621_v43, %v2798_v44  ;;  %v3294_v63 = vor.u32 %v3747_v56, %v3293_v55  ;;  %v3277_v10 = vld [vmem:[#allocation4 + $0xd0] sm:$0xf]  ;;  %v3743_v11 = vld [vmem:[#allocation4 + $0xd4] sm:$0xf0] }
  0xb6   :  { %1504 = vmatpush.bf16.msrb.mxu0 %v2769_v33  ;;  %v4017_v5 = vpop.f32.mrf.mxu0  ;;  %v2689_v37 = vor.u32 %v3593_v25, %v2686_v26  ;;  %v3278_v17 = vor.u32 %v3743_v11, %v3277_v10  ;;  %v3261_v25 = vld [vmem:[#allocation4 + $0xb0] sm:$0xf]  ;;  %v3231_v56 = vld [vmem:[#allocation4 + $0x78] sm:$0xf0]  ;;  %v3726_v11 = vld [vmem:[#allocation4 + $0x54] sm:$0xf] }
  0xb7   :  { %1517 = vmatpush.bf16.msrb.mxu1 %v2897_v34  ;;  %v3689_v34 = vld [vmem:[#allocation2 + $0x52c] sm:$0xf]  ;;  %v1267_v45 = vpop.f32.mrf.mxu1  ;;  %v1291_v50 = vpop.f32.mrf.mxu3  ;;  %v1266_v59 = vadd.f32 %v1265_v13, %v4017_v5  ;;  %v3286_v5 = vor.u32 %v3745_v1, %v3285_v0  ;;  %v3181_v44 = vld [vmem:[#allocation4 + $0x10] sm:$0xf]  ;;  %v3728_v1 = vld [vmem:[#allocation4 + $0x64] sm:$0xf] }
  0xb8   :  { %1530 = vmatpush.bf16.msrb.mxu2 %v3025_v36  ;;  %v3070_v36 = vld [vmem:[#allocation2 + $0x538] sm:$0xf0]  ;;  %v3719_v45 = vld [vmem:[#allocation4 + $0x14] sm:$0xf0] }
  0xb9   :  { %1543 = vmatpush.bf16.msrb.mxu3 %v3153_v40  ;;  %v2817_v40 = vor.u32 %v3625_v27, %v2814_v29  ;;  %v3189_v29 = vld [vmem:[#allocation4 + $0x20] sm:$0xf] }
  0xba   :  { %1505 = vmatpush.bf16.msrb.mxu0 %v2753_v46  ;;  %v3073_v46 = vor.u32 %v3689_v34, %v3070_v36  ;;  %v3253_v34 = vld [vmem:[#allocation4 + $0xa0] sm:$0xf]  ;;  %v3737_v36 = vld [vmem:[#allocation4 + $0xa4] sm:$0xf0]  ;;  %v3190_v42 = vor.u32 %v3721_v30, %v3189_v29 }
  0xbb   :  { %1518 = vmatpush.bf16.msrb.mxu1 %v2881_v47  ;;  %v3653_v47 = vld [vmem:[#allocation2 + $0x40c] sm:$0xf] }
  0xbc   :  { %1531 = vmatpush.bf16.msrb.mxu2 %v3009_v48  ;;  %v2926_v48 = vld [vmem:[#allocation2 + $0x418] sm:$0xf0] }
  0xbd   :  { %1544 = vmatpush.bf16.msrb.mxu3 %v3137_v52  ;;  %v1278_v33 = vpop.f32.mrf.mxu2  ;;  %v3229_v52 = vld [vmem:[#allocation4 + $0x70] sm:$0xf] }
  0xbe   :  { %1506 = vmatpush.bf16.msrb.mxu0 %v2737_v57  ;;  %v1254_v39 = vpop.f32.mrf.mxu0  ;;  %v2929_v57 = vor.u32 %v3653_v47, %v2926_v48  ;;  %v1279_v3 = vadd.f32 %v1278_v33, %v1266_v59  ;;  %v3245_v47 = vld [vmem:[#allocation4 + $0x90] sm:$0xf]  ;;  %v3735_v48 = vld [vmem:[#allocation4 + $0x94] sm:$0xf0] }
  0xbf   :  { %1519 = vmatpush.bf16.msrb.mxu1 %v2865_v58  ;;  %v3057_v58 = vor.u32 %v3685_v49, %v3054_v51  ;;  %v3182_v51 = vor.u32 %v3719_v45, %v3181_v44  ;;  %v3246_v55 = vor.u32 %v3735_v48, %v3245_v47  ;;  %v3333_v44 = vld [vmem:[#allocation4 + $0x140] sm:$0xf]  ;;  %v3757_v45 = vld [vmem:[#allocation4 + $0x144] sm:$0xf0]  ;;  %v3325_v47 = vld [vmem:[#allocation4 + $0x130] sm:$0xf] }
  0xc0   :  { %1532 = vmatpush.bf16.msrb.mxu2 %v2993_v16  ;;  %v3230_v16 = vor.u32 %v3731_v53, %v3229_v52  ;;  %v1292_v13 = vadd.f32 %v1291_v50, %v1279_v3  ;;  %v3173_v52 = vld [vmem:[#allocation4] sm:$0xf]  ;;  %v3717_v53 = vld [vmem:[#allocation4 + $0x4] sm:$0xf0]  ;;  %v3755_v48 = vld [vmem:[#allocation4 + $0x134] sm:$0xf0] }
  0xc1   :  { %1545 = vmatpush.bf16.msrb.mxu3 %v3121_v62  ;;  %v3729_v62 = vld [vmem:[#allocation4 + $0x64] sm:$0xf0] }
  0xc2   :  { %1507 = vmatpush.bf16.msrb.mxu0 %v2721_v4  ;;  %v3222_v2 = vor.u32 %v3729_v62, %v3221_v61  ;;  %v1293_v4 = vpop.f32.mrf.mxu3  ;;  %v3295_v61 = vld [vmem:[#allocation4 + $0xf8] sm:$0xf0]  ;;  %v3174_v62 = vor.u32 %v3717_v53, %v3173_v52  ;;  %v3736_v53 = vld [vmem:[#allocation4 + $0xa4] sm:$0xf] }
  0xc3   :  { %1520 = vmatpush.bf16.msrb.mxu1 %v2849_v6  ;;  %v3213_v6 = vld [vmem:[#allocation4 + $0x50] sm:$0xf] }
  0xc4   :  { %1533 = vmatpush.bf16.msrb.mxu2 %v2977_v7  ;;  %v3727_v7 = vld [vmem:[#allocation4 + $0x54] sm:$0xf0] }
  0xc5   :  { %1546 = vmatpush.bf16.msrb.mxu3 %v3105_v14  ;;  %v1280_v60 = vpop.f32.mrf.mxu2  ;;  %v3214_v12 = vor.u32 %v3727_v7, %v3213_v6  ;;  %v3205_v14 = vld [vmem:[#allocation4 + $0x40] sm:$0xf]  ;;  %v3744_v6 = vld [vmem:[#allocation4 + $0xe4] sm:$0xf]  ;;  %v3287_v7 = vld [vmem:[#allocation4 + $0xe8] sm:$0xf0] }
  0xc6   :  { %1508 = vmatpush.bf16.msrb.mxu0 %v2705_v22  ;;  %v3206_v21 = vor.u32 %v3725_v15, %v3205_v14  ;;  %v3746_v60 = vld [vmem:[#allocation4 + $0xf4] sm:$0xf]  ;;  %v3290_v14 = vor.u32 %v3744_v6, %v3287_v7 }
  0xc7   :  { %1521 = vmatpush.bf16.msrb.mxu1 %v2833_v23  ;;  %v3197_v23 = vld [vmem:[#allocation4 + $0x30] sm:$0xf]  ;;  %v3298_v3 = vor.u32 %v3746_v60, %v3295_v61  ;;  %v3718_v61 = vld [vmem:[#allocation4 + $0x14] sm:$0xf] }
  0xc8   :  { %1534 = vmatpush.bf16.msrb.mxu2 %v2961_v24 }
  0xc9   :  { %1547 = vmatpush.bf16.msrb.mxu3 %v3089_v28  ;;  %v4027_v28 = vld [vmem:[%s4129_s2] ss:$2 sm:$0xf] }
  0xca   :  { %1509 = vmatpush.bf16.msrb.mxu0 %v2689_v37  ;;  %v1561_v38 = vperm.slane %v4027_v28, 0  ;;  %v1562_v60 = vperm.slane %v4027_v28, 1 }
  0xcb   :  { %1522 = vmatpush.bf16.msrb.mxu1 %v2817_v40 }
  0xcc   :  { %1535 = vmatpush.bf16.msrb.mxu2 %v2945_v41  ;;  %v4037_v41 = vld [vmem:[%s4129_s2 + $0x1] ss:$2 sm:$0xf] }
  0xcd   :  { %1548 = vmatpush.bf16.msrb.mxu3 %v3073_v46  ;;  %v3254_v46 = vor.u32 %v3737_v36, %v3253_v34  ;;  %v1576_v50 = vperm.slane %v4037_v41, 0  ;;  %v3722_v34 = vld [vmem:[#allocation4 + $0x34] sm:$0xf]  ;;  %v3199_v36 = vld [vmem:[#allocation4 + $0x38] sm:$0xf0]  ;;  %v1577_v7 = vperm.slane %v4037_v41, 1 }
  0xce   :  { %1510 = vmatpush.bf16.msrb.mxu0 %v2673_v54  ;;  %v1304_v20 = vpop.f32.mrf.mxu0  ;;  %v3730_v54 = vld [vmem:[#allocation4 + $0x74] sm:$0xf] }
  0xcf   :  { %1523 = vmatpush.bf16.msrb.mxu1 %v2801_v8  ;;  %v1305_v22 = vadd.f32 %v1304_v20, %v1292_v13  ;;  %v3215_v13 = vld [vmem:[#allocation4 + $0x58] sm:$0xf0] }
  0xd0   :  { %1536 = vmatpush.bf16.msrb.mxu2 %v2929_v57  ;;  %v3237_v57 = vld [vmem:[#allocation4 + $0x80] sm:$0xf]  ;;  %v3279_v20 = vld [vmem:[#allocation4 + $0xd8] sm:$0xf0] }
  0xd1   :  { %1549 = vmatpush.bf16.msrb.mxu3 %v3057_v58  ;;  %1511 = vmatmul.bf16.vlgmr.msrb.gmra.mxu0 %v3975_v9  ;;  %v3269_v9 = vld [vmem:[#allocation4 + $0xc0] sm:$0xf]  ;;  %v3733_v58 = vld [vmem:[#allocation4 + $0x84] sm:$0xf0] }
  0xd2   :  { %1976 = vmatpush.bf16.msra.mxu0 %v3230_v16  ;;  %1524 = vmatmul.bf16.vlgmr.msrb.gmra.mxu1 %v3987_v19  ;;  %v1317_v19 = vpop.f32.mrf.mxu1  ;;  %v3270_v24 = vor.u32 %v3741_v18, %v3269_v9  ;;  %v3238_v0 = vor.u32 %v3733_v58, %v3237_v57  ;;  %v3761_v9 = vld [vmem:[#allocation4 + $0x164] sm:$0xf0]  ;;  %v3742_v18 = vld [vmem:[#allocation4 + $0xd4] sm:$0xf]  ;;  %v3317_v58 = vld [vmem:[#allocation4 + $0x120] sm:$0xf] }
  0xd3   :  { %1989 = vmatpush.bf16.msra.mxu1 %v3294_v63  ;;  %1537 = vmatmul.bf16.vlgmr.msrb.gmra.mxu2 %v3997_v32  ;;  %v3723_v32 = vld [vmem:[#allocation4 + $0x34] sm:$0xf0]  ;;  %v1318_v26 = vadd.f32 %v1317_v19, %v1305_v22  ;;  %v3234_v63 = vor.u32 %v3730_v54, %v3231_v56  ;;  %v3218_v22 = vor.u32 %v3726_v11, %v3215_v13  ;;  %v3341_v19 = vld [vmem:[#allocation4 + $0x150] sm:$0xf]  ;;  %v3255_v54 = vld [vmem:[#allocation4 + $0xa8] sm:$0xf0] }
  0xd4   :  { %1550 = vmatmul.bf16.vlgmr.msrb.gmra.mxu3 %v3999_v35  ;;  %v3739_v35 = vld [vmem:[#allocation4 + $0xb4] sm:$0xf0]  ;;  %v3198_v27 = vor.u32 %v3723_v32, %v3197_v23  ;;  %v3724_v32 = vld [vmem:[#allocation4 + $0x44] sm:$0xf]  ;;  %v3309_v11 = vld [vmem:[#allocation4 + $0x110] sm:$0xf] }
  0xd5   :  { %v3262_v31 = vor.u32 %v3739_v35, %v3261_v25  ;;  %v1555_v37 = vmax.f32 %v1318_v26, 0.0  ;;  %v3759_v23 = vld [vmem:[#allocation4 + $0x154] sm:$0xf0]  ;;  %v3282_v25 = vor.u32 %v3742_v18, %v3279_v20  ;;  %v3740_v26 = vld [vmem:[#allocation4 + $0xc4] sm:$0xf] }
  0xd6   :  { %1977 = vmatpush.bf16.msra.mxu0 %v3222_v2  ;;  %v4029_v33 = vpop.f32.mrf.mxu2  ;;  %v1306_v40 = vpop.f32.mrf.mxu0  ;;  %v3223_v2 = vld [vmem:[#allocation4 + $0x68] sm:$0xf0]  ;;  %v3342_v29 = vor.u32 %v3759_v23, %v3341_v19 }
  0xd7   :  { %1990 = vmatpush.bf16.msra.mxu1 %v3286_v5  ;;  %v4032_v39 = vpop.f32.mrf.mxu3  ;;  %v1569_v49 = vmul.f32 %v1561_v38, %v1555_v37  ;;  %v3357_v5 = vld [vmem:[#allocation4 + $0x170] sm:$0xf]  ;;  %v3226_v10 = vor.u32 %v3728_v1, %v3223_v2  ;;  %v3734_v1 = vld [vmem:[#allocation4 + $0x94] sm:$0xf]  ;;  %v3247_v2 = vld [vmem:[#allocation4 + $0x98] sm:$0xf0] }
  0xd8   :  { %v1344_v35 = vadd.f32 %v4032_v39, %v4029_v33  ;;  %v3202_v39 = vor.u32 %v3722_v34, %v3199_v36  ;;  %v3239_v18 = vld [vmem:[#allocation4 + $0x88] sm:$0xf0] }
  0xd9   :  { %v1584_v16 = vadd.f32 %v1576_v50, %v1569_v49  ;;  %v3720_v49 = vld [vmem:[#allocation4 + $0x24] sm:$0xf]  ;;  %v3191_v50 = vld [vmem:[#allocation4 + $0x28] sm:$0xf0] }
  0xda   :  { %1978 = vmatpush.bf16.msra.mxu0 %v3214_v12  ;;  %v1319_v43 = vpop.f32.mrf.mxu1  ;;  %v3763_v12 = vld [vmem:[#allocation4 + $0x174] sm:$0xf0]  ;;  %v3194_v57 = vor.u32 %v3720_v49, %v3191_v50  ;;  %v3351_v34 = vld [vmem:[#allocation4 + $0x168] sm:$0xf0] }
  0xdb   :  { %1991 = vmatpush.bf16.msra.mxu1 %v3278_v17  ;;  %v4040_v4 = vpack.c.bf16 %v1584_v16, %v1584_v16  ;;  %v3358_v15 = vor.u32 %v3763_v12, %v3357_v5  ;;  %v3349_v17 = vld [vmem:[#allocation4 + $0x160] sm:$0xf]  ;;  %v3263_v43 = vld [vmem:[#allocation4 + $0xb8] sm:$0xf0]  ;;  %v3753_v16 = vld [vmem:[#allocation4 + $0x124] sm:$0xf0] }
  0xdc   :  { %v3318_v5 = vor.u32 %v3753_v16, %v3317_v58  ;;  %v3751_v12 = vld [vmem:[#allocation4 + $0x114] sm:$0xf0]  ;;  %v3335_v49 = vld [vmem:[#allocation4 + $0x148] sm:$0xf0]  ;;  %v3397_v58 = vld [vmem:[#allocation4 + $0x1c0] sm:$0xf] }
  0xdd   :  { %2002 = vmatpush.bf16.msra.mxu2 %v3358_v15  ;;  %v3175_v15 = vld [vmem:[#allocation4 + $0x8] sm:$0xf0]  ;;  %v3310_v19 = vor.u32 %v3751_v12, %v3309_v11  ;;  %v3769_v11 = vld [vmem:[#allocation4 + $0x1a4] sm:$0xf0] }
  0xde   :  { %1979 = vmatpush.bf16.msra.mxu0 %v3206_v21  ;;  %v1332_v8 = vpop.f32.mrf.mxu2  ;;  %v3350_v21 = vor.u32 %v3761_v9, %v3349_v17  ;;  %v3250_v17 = vor.u32 %v3734_v1, %v3247_v2  ;;  %v3732_v9 = vld [vmem:[#allocation4 + $0x84] sm:$0xf] }
  0xdf   :  { %1992 = vmatpush.bf16.msra.mxu1 %v3270_v24  ;;  %v1345_v59 = vpop.f32.mrf.mxu3  ;;  %v3207_v24 = vld [vmem:[#allocation4 + $0x48] sm:$0xf0]  ;;  %v3326_v8 = vor.u32 %v3755_v48, %v3325_v47  ;;  %v3756_v48 = vld [vmem:[#allocation4 + $0x144] sm:$0xf] }
  0xe0   :  { %v3210_v30 = vor.u32 %v3724_v32, %v3207_v24  ;;  %v3301_v32 = vld [vmem:[#allocation4 + $0x100] sm:$0xf]  ;;  %v3749_v24 = vld [vmem:[#allocation4 + $0x104] sm:$0xf0] }
  0xe1   :  { %2003 = vmatpush.bf16.msra.mxu2 %v3350_v21 }
  0xe2   :  { %1980 = vmatpush.bf16.msra.mxu0 %v3198_v27  ;;  %v3271_v27 = vld [vmem:[#allocation4 + $0xc8] sm:$0xf0] }
  0xe3   :  { %1993 = vmatpush.bf16.msra.mxu1 %v3262_v31  ;;  %v3274_v37 = vor.u32 %v3740_v26, %v3271_v27  ;;  %v3762_v26 = vld [vmem:[#allocation4 + $0x174] sm:$0xf]  ;;  %v3359_v27 = vld [vmem:[#allocation4 + $0x178] sm:$0xf0] }
  0xe5   :  { %2004 = vmatpush.bf16.msra.mxu2 %v3342_v29  ;;  %v3302_v29 = vor.u32 %v3749_v24, %v3301_v32  ;;  %v3765_v32 = vld [vmem:[#allocation4 + $0x184] sm:$0xf0] }
  0xe6   :  { %1981 = vmatpush.bf16.msra.mxu0 %v3190_v42  ;;  %v3738_v42 = vld [vmem:[#allocation4 + $0xb4] sm:$0xf] }
  0xe7   :  { %1994 = vmatpush.bf16.msra.mxu1 %v3254_v46  ;;  %v3334_v46 = vor.u32 %v3757_v45, %v3333_v44  ;;  %v3758_v44 = vld [vmem:[#allocation4 + $0x154] sm:$0xf]  ;;  %v3343_v45 = vld [vmem:[#allocation4 + $0x158] sm:$0xf0] }
  0xe9   :  { %2005 = vmatpush.bf16.msra.mxu2 %v3334_v46  ;;  %v3777_v46 = vld [vmem:[#allocation4 + $0x1e4] sm:$0xf0] }
  0xea   :  { %1982 = vmatpush.bf16.msra.mxu0 %v3182_v51  ;;  %v3266_v51 = vor.u32 %v3738_v42, %v3263_v43  ;;  %v3779_v42 = vld [vmem:[#allocation4 + $0x1f4] sm:$0xf0] }
  0xeb   :  { %1995 = vmatpush.bf16.msra.mxu1 %v3246_v55 }
  0xed   :  { %2006 = vmatpush.bf16.msra.mxu2 %v3326_v8  ;;  %v3754_v8 = vld [vmem:[#allocation4 + $0x134] sm:$0xf] }
  0xee   :  { %1983 = vmatpush.bf16.msra.mxu0 %v3174_v62  ;;  %v1356_v31 = vpop.f32.mrf.mxu0  ;;  %v3183_v62 = vld [vmem:[#allocation4 + $0x18] sm:$0xf0] }
  0xef   :  { %1996 = vmatpush.bf16.msra.mxu1 %v3238_v0  ;;  %v1357_v38 = vadd.f32 %v1356_v31, %v1344_v35  ;;  %v1369_v40 = vpop.f32.mrf.mxu1  ;;  %v3242_v35 = vor.u32 %v3732_v9, %v3239_v18  ;;  %v3760_v31 = vld [vmem:[#allocation4 + $0x164] sm:$0xf]  ;;  %v3373_v9 = vld [vmem:[#allocation4 + $0x190] sm:$0xf]  ;;  %v3767_v18 = vld [vmem:[#allocation4 + $0x194] sm:$0xf0] }
  0xf1   :  { %1984 = vmatmul.bf16.vlgmr.msra.gmra.mxu0 %v4040_v4  ;;  %v1370_v33 = vadd.f32 %v1369_v40, %v1357_v38  ;;  %2007 = vmatpush.bf16.msra.mxu2 %v3318_v5  ;;  %v3421_v40 = vld [vmem:[#allocation4 + $0x1f0] sm:$0xf] }
  0xf2   :  { %2028 = vmatpush.bf16.msrb.mxu0 %v3234_v63  ;;  %v3258_v63 = vor.u32 %v3736_v53, %v3255_v54  ;;  %v3422_v43 = vor.u32 %v3779_v42, %v3421_v40  ;;  %v3405_v54 = vld [vmem:[#allocation4 + $0x1d0] sm:$0xf]  ;;  %v1578_v40 = vperm.slane %v4037_v41, 2 }
  0xf3   :  { %2041 = vmatpush.bf16.msrb.mxu1 %v3298_v3 }
  0xf4   :  { %2015 = vmatpush.bf16.msra.mxu3 %v3422_v43 }
  0xf5   :  { %2008 = vmatpush.bf16.msra.mxu2 %v3310_v19 }
  0xf6   :  { %2029 = vmatpush.bf16.msrb.mxu0 %v3226_v10  ;;  %v1382_v52 = vpop.f32.mrf.mxu2  ;;  %v1358_v0 = vpop.f32.mrf.mxu0  ;;  %v3186_v10 = vor.u32 %v3718_v61, %v3183_v62  ;;  %v3319_v61 = vld [vmem:[#allocation4 + $0x128] sm:$0xf0] }
  0xf7   :  { %2042 = vmatpush.bf16.msrb.mxu1 %v3290_v14  ;;  %v1383_v55 = vadd.f32 %v1382_v52, %v1370_v33  ;;  %v1395_v56 = vpop.f32.mrf.mxu3  ;;  %v1371_v3 = vpop.f32.mrf.mxu1  ;;  %v3716_v14 = vld [vmem:[#allocation4 + $0x4] sm:$0xf]  ;;  %v3346_v33 = vor.u32 %v3758_v44, %v3343_v45  ;;  %v3338_v52 = vor.u32 %v3756_v48, %v3335_v49  ;;  %v3771_v0 = vld [vmem:[#allocation4 + $0x1b4] sm:$0xf0] }
  0xf8   :  { %v3178_v23 = vor.u32 %v3716_v14, %v3175_v15  ;;  %v3750_v3 = vld [vmem:[#allocation4 + $0x114] sm:$0xf]  ;;  %v3748_v14 = vld [vmem:[#allocation4 + $0x104] sm:$0xf]  ;;  %v3303_v15 = vld [vmem:[#allocation4 + $0x108] sm:$0xf0] }
  0xf9   :  { %v1396_v59 = vadd.f32 %v1395_v56, %v1383_v55  ;;  %2009 = vmatpush.bf16.msra.mxu2 %v3302_v29  ;;  %v3775_v55 = vld [vmem:[#allocation4 + $0x1d4] sm:$0xf0] }
  0xfa   :  { %2030 = vmatpush.bf16.msrb.mxu0 %v3218_v22  ;;  %v3406_v56 = vor.u32 %v3775_v55, %v3405_v54  ;;  %v3770_v55 = vld [vmem:[#allocation4 + $0x1b4] sm:$0xf] }
  0xfb   :  { %2043 = vmatpush.bf16.msrb.mxu1 %v3282_v25  ;;  %v1556_v6 = vmax.f32 %v1396_v59, 0.0  ;;  %v3773_v59 = vld [vmem:[#allocation4 + $0x1c4] sm:$0xf0] }
  0xfc   :  { %v3398_v62 = vor.u32 %v3773_v59, %v3397_v58  ;;  %v3383_v58 = vld [vmem:[#allocation4 + $0x1a8] sm:$0xf0]  ;;  %v3766_v59 = vld [vmem:[#allocation4 + $0x194] sm:$0xf] }
  0xfd   :  { %v1570_v13 = vmul.f32 %v1562_v60, %v1556_v6  ;;  %v3752_v60 = vld [vmem:[#allocation4 + $0x124] sm:$0xf]  ;;  %v3311_v6 = vld [vmem:[#allocation4 + $0x118] sm:$0xf0] }
  0xfe   :  { %2031 = vmatpush.bf16.msrb.mxu0 %v3210_v30  ;;  %v1384_v20 = vpop.f32.mrf.mxu2  ;;  %v3362_v30 = vor.u32 %v3762_v26, %v3359_v27  ;;  %v3322_v1 = vor.u32 %v3752_v60, %v3319_v61  ;;  %v3314_v12 = vor.u32 %v3750_v3, %v3311_v6  ;;  %v3423_v26 = vld [vmem:[#allocation4 + $0x1f8] sm:$0xf0] }
  0xff   :  { %2044 = vmatpush.bf16.msrb.mxu1 %v3274_v37  ;;  %v1585_v21 = vadd.f32 %v1577_v7, %v1570_v13  ;;  %v1397_v22 = vpop.f32.mrf.mxu3  ;;  %v3354_v37 = vor.u32 %v3760_v31, %v3351_v34  ;;  %v3306_v20 = vor.u32 %v3748_v14, %v3303_v15  ;;  %v1563_v34 = vperm.slane %v4027_v28, 2  ;;  %v3375_v60 = vld [vmem:[#allocation4 + $0x198] sm:$0xf0] }
 0x100   :  { %2054 = vmatpush.bf16.msrb.mxu2 %v3362_v30  ;;  %v3374_v22 = vor.u32 %v3767_v18, %v3373_v9  ;;  %v3378_v61 = vor.u32 %v3766_v59, %v3375_v60  ;;  %v1564_v15 = vperm.slane %v4027_v28, 3  ;;  %v1579_v9 = vperm.slane %v4037_v41, 3  ;;  %v3787_v41 = vld [vmem:[%s4132_s5 + $0x38] sm:$0xff] }
 0x101   :  { %v1589_v25 = vpack.c.bf16 %v1585_v21, %v1585_v21 }
 0x102   :  { %2032 = vmatpush.bf16.msrb.mxu0 %v3202_v39  ;;  %v3413_v39 = vld [vmem:[#allocation4 + $0x1e0] sm:$0xf] }
 0x103   :  { %2045 = vmatpush.bf16.msrb.mxu1 %v3266_v51 }
 0x104   :  { %1997 = vmatmul.bf16.vlgmr.msra.gmra.mxu1 %v1589_v25  ;;  %2055 = vmatpush.bf16.msrb.mxu2 %v3354_v37  ;;  %v3415_v37 = vld [vmem:[#allocation4 + $0x1e8] sm:$0xf0] }
 0x106   :  { %2033 = vmatpush.bf16.msrb.mxu0 %v3194_v57  ;;  %v3327_v57 = vld [vmem:[#allocation4 + $0x138] sm:$0xf0] }
 0x107   :  { %2046 = vmatpush.bf16.msrb.mxu1 %v3258_v63  ;;  %v3330_v16 = vor.u32 %v3754_v8, %v3327_v57  ;;  %v3389_v63 = vld [vmem:[#allocation4 + $0x1b0] sm:$0xf]  ;;  %v3768_v57 = vld [vmem:[#allocation4 + $0x1a4] sm:$0xf] }
 0x108   :  { %2056 = vmatpush.bf16.msrb.mxu2 %v3346_v33  ;;  %v3390_v5 = vor.u32 %v3771_v0, %v3389_v63  ;;  %v3367_v63 = vld [vmem:[#allocation4 + $0x188] sm:$0xf0] }
 0x10a   :  { %2034 = vmatpush.bf16.msrb.mxu0 %v3186_v10  ;;  %v3381_v10 = vld [vmem:[#allocation4 + $0x1a0] sm:$0xf] }
 0x10b   :  { %2047 = vmatpush.bf16.msrb.mxu1 %v3250_v17  ;;  %v3382_v17 = vor.u32 %v3769_v11, %v3381_v10 }
 0x10c   :  { %2057 = vmatpush.bf16.msrb.mxu2 %v3338_v52 }
 0x10e   :  { %2035 = vmatpush.bf16.msrb.mxu0 %v3178_v23  ;;  %v1408_v36 = vpop.f32.mrf.mxu0  ;;  %v3365_v23 = vld [vmem:[#allocation4 + $0x180] sm:$0xf] }
 0x10f   :  { %2048 = vmatpush.bf16.msrb.mxu1 %v3242_v35  ;;  %v1421_v38 = vpop.f32.mrf.mxu1  ;;  %v3778_v35 = vld [vmem:[#allocation4 + $0x1f4] sm:$0xf] }
 0x110   :  { %2058 = vmatpush.bf16.msrb.mxu2 %v3330_v16  ;;  %v1422_v13 = vadd.f32 %v1421_v38, %v1408_v36  ;;  %v3426_v30 = vor.u32 %v3778_v35, %v3423_v26  ;;  %v3776_v36 = vld [vmem:[#allocation4 + $0x1e4] sm:$0xf]  ;;  %v3386_v16 = vor.u32 %v3768_v57, %v3383_v58 }
 0x111   :  { %2036 = vmatmul.bf16.vlgmr.msrb.gmra.mxu0 %v4040_v4  ;;  %v3414_v4 = vor.u32 %v3777_v46, %v3413_v39  ;;  %v3418_v42 = vor.u32 %v3776_v36, %v3415_v37  ;;  %v3774_v39 = vld [vmem:[#allocation4 + $0x1d4] sm:$0xf]  ;;  %v3407_v46 = vld [vmem:[#allocation4 + $0x1d8] sm:$0xf0]  ;;  %v3784_v36 = vld [vmem:[%s4132_s5 + $0x20] sm:$0xff] }
 0x112   :  { %v3410_v48 = vor.u32 %v3774_v39, %v3407_v46  ;;  %2231 = vmatpush.bf16.msra.mxu0 %v3787_v41  ;;  %v3795_v37 = vld [vmem:[%s4132_s5 + $0x78] sm:$0xff]  ;;  %v3780_v39 = vld [vmem:[%s4132_s5] sm:$0xff] }
 0x113   :  { %2016 = vmatpush.bf16.msra.mxu3 %v3414_v4  ;;  %2244 = vmatpush.bf16.msra.mxu1 %v3795_v37  ;;  %v3792_v46 = vld [vmem:[%s4132_s5 + $0x60] sm:$0xff] }
 0x114   :  { %2049 = vmatmul.bf16.vlgmr.msrb.gmra.mxu1 %v1589_v25  ;;  %2059 = vmatpush.bf16.msrb.mxu2 %v3322_v1  ;;  %v3366_v25 = vor.u32 %v3765_v32, %v3365_v23 }
 0x116   :  { %v1434_v47 = vpop.f32.mrf.mxu2  ;;  %v1410_v50 = vpop.f32.mrf.mxu0 }
 0x117   :  { %v1447_v51 = vpop.f32.mrf.mxu3  ;;  %v1423_v53 = vpop.f32.mrf.mxu1  ;;  %2017 = vmatpush.bf16.msra.mxu3 %v3406_v56  ;;  %v1435_v21 = vadd.f32 %v1434_v47, %v1422_v13  ;;  %v3772_v50 = vld [vmem:[#allocation4 + $0x1c4] sm:$0xf]  ;;  %v3391_v56 = vld [vmem:[#allocation4 + $0x1b8] sm:$0xf0] }
 0x118   :  { %2060 = vmatpush.bf16.msrb.mxu2 %v3314_v12  ;;  %v3394_v8 = vor.u32 %v3770_v55, %v3391_v56  ;;  %v3427_v55 = vld [vmem:[%s4131_s4 + $0x1] ss:$2 sm:$0x3] }
 0x119   :  { %v1448_v19 = vadd.f32 %v1447_v51, %v1435_v21  ;;  %v3399_v51 = vld [vmem:[#allocation4 + $0x1c8] sm:$0xf0]  ;;  %v2093_v58 = vperm.slane %v3427_v55, 0 }
 0x11a   :  { %v3402_v52 = vor.u32 %v3772_v50, %v3399_v51  ;;  %v3788_v51 = vld [vmem:[%s4132_s5 + $0x40] sm:$0xff] }
 0x11b   :  { %2018 = vmatpush.bf16.msra.mxu3 %v3398_v62  ;;  %v3764_v62 = vld [vmem:[#allocation4 + $0x184] sm:$0xf] }
 0x11c   :  { %2061 = vmatpush.bf16.msrb.mxu2 %v3306_v20  ;;  %v3370_v0 = vor.u32 %v3764_v62, %v3367_v63 }
 0x11e   :  { %v1436_v2 = vpop.f32.mrf.mxu2 }
 0x11f   :  { %v1449_v7 = vpop.f32.mrf.mxu3  ;;  %2019 = vmatpush.bf16.msra.mxu3 %v3390_v5 }
 0x123   :  { %2020 = vmatpush.bf16.msra.mxu3 %v3382_v17 }
 0x127   :  { %2021 = vmatpush.bf16.msra.mxu3 %v3374_v22 }
 0x12b   :  { %2022 = vmatpush.bf16.msra.mxu3 %v3366_v25 }
 0x12e   :  { %v1460_v24 = vpop.f32.mrf.mxu0 }
 0x12f   :  { %v1461_v27 = vadd.f32 %v1460_v24, %v1448_v19  ;;  %v1473_v29 = vpop.f32.mrf.mxu1  ;;  %2067 = vmatpush.bf16.msrb.mxu3 %v3426_v30 }
 0x131   :  { %v1474_v31 = vadd.f32 %v1473_v29, %v1461_v27 }
 0x133   :  { %v1557_v38 = vmax.f32 %v1474_v31, 0.0  ;;  %2068 = vmatpush.bf16.msrb.mxu3 %v3418_v42  ;;  %v3786_v31 = vld [vmem:[%s4132_s5 + $0x30] sm:$0xff] }
 0x134   :  { %2232 = vmatpush.bf16.msra.mxu0 %v3786_v31  ;;  %v3782_v42 = vld [vmem:[%s4132_s5 + $0x10] sm:$0xff] }
 0x135   :  { %v1571_v43 = vmul.f32 %v1563_v34, %v1557_v38  ;;  %v3785_v34 = vld [vmem:[%s4132_s5 + $0x28] sm:$0xff]  ;;  %v3783_v38 = vld [vmem:[%s4132_s5 + $0x18] sm:$0xff] }
 0x136   :  { %v1486_v44 = vpop.f32.mrf.mxu2  ;;  %v1462_v33 = vpop.f32.mrf.mxu0 }
 0x137   :  { %v1499_v45 = vpop.f32.mrf.mxu3  ;;  %v1586_v4 = vadd.f32 %v1578_v40, %v1571_v43  ;;  %v1475_v47 = vpop.f32.mrf.mxu1  ;;  %2069 = vmatpush.bf16.msrb.mxu3 %v3410_v48  ;;  %v3794_v43 = vld [vmem:[%s4132_s5 + $0x70] sm:$0xff] }
 0x138   :  { %v1500_v1 = vadd.f32 %v1499_v45, %v1486_v44  ;;  %2233 = vmatpush.bf16.msra.mxu0 %v3785_v34  ;;  %2245 = vmatpush.bf16.msra.mxu1 %v3794_v43  ;;  %v3781_v44 = vld [vmem:[%s4132_s5 + $0x8] sm:$0xff]  ;;  %v3790_v48 = vld [vmem:[%s4132_s5 + $0x50] sm:$0xff]  ;;  %v3814_v43 = vld [vmem:[%s4133_s6 + $0x1] ss:$0 sm:$0xff] }
 0x139   :  { %v1590_v49 = vpack.c.bf16 %v1586_v4, %v1586_v4  ;;  %v3793_v45 = vld [vmem:[%s4132_s5 + $0x68] sm:$0xff]  ;;  %v3791_v4 = vld [vmem:[%s4132_s5 + $0x58] sm:$0xff] }
 0x13b   :  { %2010 = vmatmul.bf16.vlgmr.msra.gmra.mxu2 %v1590_v49  ;;  %2070 = vmatpush.bf16.msrb.mxu3 %v3402_v52  ;;  %v2082_v52 = vld [vmem:[%s4131_s4] ss:$2 sm:$0x3] }
 0x13c   :  { %2234 = vmatpush.bf16.msra.mxu0 %v3784_v36  ;;  %2246 = vmatpush.bf16.msra.mxu1 %v3793_v45 }
 0x13e   :  { %v1488_v53 = vpop.f32.mrf.mxu2 }
 0x13f   :  { %v1501_v54 = vpop.f32.mrf.mxu3  ;;  %2071 = vmatpush.bf16.msrb.mxu3 %v3394_v8  ;;  %v2084_v8 = vperm.slane %v2082_v52, 0 }
 0x140   :  { %2235 = vmatpush.bf16.msra.mxu0 %v3783_v38  ;;  %2247 = vmatpush.bf16.msra.mxu1 %v3792_v46 }
 0x143   :  { %2072 = vmatpush.bf16.msrb.mxu3 %v3386_v16 }
 0x144   :  { %2236 = vmatpush.bf16.msra.mxu0 %v3782_v42  ;;  %2248 = vmatpush.bf16.msra.mxu1 %v3791_v4 }
 0x147   :  { %2073 = vmatpush.bf16.msrb.mxu3 %v3378_v61 }
 0x148   :  { %2237 = vmatpush.bf16.msra.mxu0 %v3781_v44  ;;  %2249 = vmatpush.bf16.msra.mxu1 %v3790_v48  ;;  %v3816_v48 = vld [vmem:[%s4135_s8] ss:$0 sm:$0xff] }
 0x14b   :  { %2062 = vmatmul.bf16.vlgmr.msrb.gmra.mxu2 %v1590_v49  ;;  %2074 = vmatpush.bf16.msrb.mxu3 %v3370_v0  ;;  %v3789_v49 = vld [vmem:[%s4132_s5 + $0x48] sm:$0xff] }
 0x14c   :  { %2238 = vmatpush.bf16.msra.mxu0 %v3780_v39  ;;  %2250 = vmatpush.bf16.msra.mxu1 %v3789_v49 }
 0x14e   :  { %v1512_v2 = vpop.f32.mrf.mxu0 }
 0x14f   :  { %v1525_v3 = vpop.f32.mrf.mxu1  ;;  %v1513_v6 = vadd.f32 %v1512_v2, %v1500_v1  ;;  %v2085_v1 = vperm.slane %v2082_v52, 1 }
 0x150   :  { %2251 = vmatpush.bf16.msra.mxu1 %v3788_v51 }
 0x151   :  { %v1526_v7 = vadd.f32 %v1525_v3, %v1513_v6  ;;  %v2094_v3 = vperm.slane %v3427_v55, 1 }
 0x156   :  { %v1538_v5 = vpop.f32.mrf.mxu2  ;;  %v1514_v12 = vpop.f32.mrf.mxu0 }
 0x157   :  { %v1539_v10 = vadd.f32 %v1538_v5, %v1526_v7  ;;  %v1551_v11 = vpop.f32.mrf.mxu3  ;;  %v1527_v13 = vpop.f32.mrf.mxu1 }
 0x158   :  { %v3813_v13 = vld [vmem:[%s4133_s6] ss:$0 sm:$0xff] }
 0x159   :  { %v1552_v14 = vadd.f32 %v1551_v11, %v1539_v10 }
 0x15b   :  { %v1558_v17 = vmax.f32 %v1552_v14, 0.0 }
 0x15d   :  { %v1572_v18 = vmul.f32 %v1564_v15, %v1558_v17 }
 0x15e   :  { %v1540_v20 = vpop.f32.mrf.mxu2 }
 0x15f   :  { %v1587_v21 = vadd.f32 %v1579_v9, %v1572_v18  ;;  %v1553_v22 = vpop.f32.mrf.mxu3  ;;  %v3803_v20 = vld [vmem:[#allocation6 + $0x38] sm:$0xff] }
 0x160   :  { %2353 = vmatpush.bf16.msra.mxu2 %v3803_v20  ;;  %v3801_v22 = vld [vmem:[#allocation6 + $0x28] sm:$0xff] }
 0x161   :  { %v1591_v19 = vpack.c.bf16 %v1587_v21, %v1587_v21  ;;  %v3802_v21 = vld [vmem:[#allocation6 + $0x30] sm:$0xff] }
 0x163   :  { %2023 = vmatmul.bf16.vlgmr.msra.gmra.mxu3 %v1591_v19 }
 0x164   :  { %2354 = vmatpush.bf16.msra.mxu2 %v3802_v21 }
 0x168   :  { %2355 = vmatpush.bf16.msra.mxu2 %v3801_v22 }
 0x16e   :  { %v1985_v23 = vpop.f32.mrf.mxu0 }
 0x173   :  { %2075 = vmatmul.bf16.vlgmr.msrb.gmra.mxu3 %v1591_v19  ;;  %v3800_v19 = vld [vmem:[#allocation6 + $0x20] sm:$0xff] }
 0x174   :  { %2356 = vmatpush.bf16.msra.mxu2 %v3800_v19 }
 0x176   :  { %v1987_v32 = vpop.f32.mrf.mxu0 }
 0x177   :  { %v3798_v32 = vld [vmem:[#allocation6 + $0x10] sm:$0xff] }
 0x181   :  { %v1998_v24 = vpop.f32.mrf.mxu1 }
 0x182   :  { %v1999_v25 = vadd.f32 %v1998_v24, %v1985_v23  ;;  %v3799_v23 = vld [vmem:[#allocation6 + $0x18] sm:$0xff] }
 0x183   :  { %2357 = vmatpush.bf16.msra.mxu2 %v3799_v23 }
 0x187   :  { %2358 = vmatpush.bf16.msra.mxu2 %v3798_v32 }
 0x189   :  { %v2000_v26 = vpop.f32.mrf.mxu1 }
 0x18a   :  { %v3796_v26 = vld [vmem:[#allocation6] sm:$0xff] }
 0x18e   :  { %v2037_v35 = vpop.f32.mrf.mxu0 }
 0x191   :  { %v2050_v29 = vpop.f32.mrf.mxu1 }
 0x192   :  { %v2051_v30 = vadd.f32 %v2050_v29, %v2037_v35 }
 0x196   :  { %v2039_v27 = vpop.f32.mrf.mxu0 }
 0x199   :  { %v2052_v28 = vpop.f32.mrf.mxu1 }
 0x1be   :  { %v2011_v40 = vpop.f32.mrf.mxu2 }
 0x1bf   :  { %v2012_v53 = vadd.f32 %v2011_v40, %v1999_v25  ;;  %v3797_v25 = vld [vmem:[#allocation6 + $0x8] sm:$0xff] }
 0x1c0   :  { %2359 = vmatpush.bf16.msra.mxu2 %v3797_v25 }
 0x1c4   :  { %2360 = vmatpush.bf16.msra.mxu2 %v3796_v26 }
 0x1c6   :  { %v2013_v33 = vpop.f32.mrf.mxu2 }
 0x1c7   :  { %v3815_v33 = vld [vmem:[%s4133_s6 + $0x2] ss:$0 sm:$0xff] }
 0x1ce   :  { %v2063_v47 = vpop.f32.mrf.mxu2 }
 0x1cf   :  { %v2064_v62 = vadd.f32 %v2063_v47, %v2051_v30 }
 0x1d6   :  { %v2065_v50 = vpop.f32.mrf.mxu2 }
 0x1e6   :  { %v2024_v54 = vpop.f32.mrf.mxu3 }
 0x1e7   :  { %v2025_v56 = vadd.f32 %v2024_v54, %v2012_v53 }
 0x1e9   :  { %v2080_v57 = vmax.f32 %v2025_v56, 0.0 }
 0x1eb   :  { %v2088_v16 = vmul.f32 %v2084_v8, %v2080_v57 }
 0x1ed   :  { %v2097_v59 = vadd.f32 %v2093_v58, %v2088_v16 }
 0x1ee   :  { %v2026_v60 = vpop.f32.mrf.mxu3 }
 0x1ef   :  { %v2099_v61 = vpack.c.bf16 %v2097_v59, %v2097_v59 }
 0x1f1   :  { %2239 = vmatmul.bf16.vlgmr.msra.gmra.mxu0 %v2099_v61 }
 0x1f6   :  { %v2076_v63 = vpop.f32.mrf.mxu3 }
 0x1f7   :  { %v2077_v0 = vadd.f32 %v2076_v63, %v2064_v62 }
 0x1f9   :  { %v2081_v2 = vmax.f32 %v2077_v0, 0.0 }
 0x1fb   :  { %v2089_v6 = vmul.f32 %v2085_v1, %v2081_v2  ;;  %v3817_v1 = vld [vmem:[%s4135_s8 + $0x1] ss:$0 sm:$0xff] }
 0x1fd   :  { %v2098_v7 = vadd.f32 %v2094_v3, %v2089_v6  ;;  %v3818_v3 = vld [vmem:[%s4135_s8 + $0x2] ss:$0 sm:$0xff] }
 0x1fe   :  { %v2078_v5 = vpop.f32.mrf.mxu3 }
 0x1ff   :  { %v2100_v10 = vpack.c.bf16 %v2098_v7, %v2098_v7 }
 0x201   :  { %2252 = vmatmul.bf16.vlgmr.msra.gmra.mxu1 %v2100_v10 }
 0x26e   :  { %v2240_v11 = vpop.f32.mrf.mxu0 }
 0x26f   :  { %v2241_v14 = vadd.f32 %v3813_v13, %v2240_v11 }
 0x276   :  { %v2242_v12 = vpop.f32.mrf.mxu0 }
 0x27e   :  { %v2253_v15 = vpop.f32.mrf.mxu1 }
 0x27f   :  { %v2254_v17 = vadd.f32 %v2253_v15, %v2241_v14 }
 0x281   :  { %2257 = vadd.xlane.f32.xlu0 %v2254_v17  ;;  %v2260_v18 = vmul.f32 %v2254_v17, %v2254_v17 }
 0x286   :  { %v2255_v9 = vpop.f32.mrf.mxu1 }
 0x289   :  { %2261 = vadd.xlane.f32.xlu0 %v2260_v18 }
 0x2f4   :  { %v2258_v24 = vpop.xlane.xlu0 %2257 }
 0x2f5   :  { %v2259_v35 = vmul.f32 0.03125, %v2258_v24 }
 0x2f7   :  { %v2264_v29 = vmul.f32 %v2259_v35, %v2259_v35  ;;  %v2266_v42 = vsub.f32 %v2254_v17, %v2259_v35 }
 0x2fc   :  { %v2262_v27 = vpop.xlane.xlu0 %2261 }
 0x2fd   :  { %v2263_v30 = vmul.f32 0.03125, %v2262_v27 }
 0x2ff   :  { %v2265_v28 = vsub.f32 %v2263_v30, %v2264_v29 }
 0x301   :  { %v2267_v41 = vadd.f32 1e-05, %v2265_v28 }
 0x303   :  { %3819 = vrsqrt.f32 %v2267_v41  ;;  %vm2274_vm1 = vweird.f32 %v2267_v41 }
 0x309   :  { %v3820_v31 = vpop.eup %3819 }
 0x30a   :  { %v2269_v34 = vmul.f32 %v3820_v31, %v2267_v41  ;;  %vm2275_vm0 = vweird.f32 %v3820_v31 }
 0x30b   :  { %vm2276_vm2 = vmor %vm2274_vm1, %vm2275_vm0 }
 0x30c   :  { %v2270_v36 = vmul.f32 %v3820_v31, %v2269_v34 }
 0x30e   :  { %v2271_v37 = vmul.f32 0.5, %v2270_v36 }
 0x310   :  { %v2272_v38 = vsub.f32 1.5, %v2271_v37 }
 0x312   :  { %v2273_v40 = vmul.f32 %v3820_v31, %v2272_v38 }
 0x314   :  { %v2277_v44 = vsel %vm2276_vm2, %v3820_v31, %v2273_v40 }
 0x315   :  { %v2278_v45 = vmul.f32 %v2277_v44, %v2266_v42 }
 0x317   :  { %v2281_v39 = vmul.f32 %v3814_v43, %v2278_v45 }
 0x319   :  { %v2284_v46 = vadd.f32 %v3815_v33, %v2281_v39 }
 0x31b   :  { %v2285_v4 = vmax.f32 %v2284_v46, 0.0 }
 0x31d   :  { %v2286_v47 = vpack.c.bf16 %v2285_v4, %v2285_v4 }
 0x31f   :  { %2361 = vmatmul.bf16.vlgmr.msra.gmra.mxu2 %v2286_v47 }
 0x3a2   :  { %v2362_v49 = vpop.f32.mrf.mxu2 }
 0x3a3   :  { %v2363_v50 = vadd.f32 %v3816_v48, %v2362_v49 }
 0x3a5   :  { %2366 = vadd.xlane.f32.xlu1 %v2363_v50  ;;  %v2369_v52 = vmul.f32 %v2363_v50, %v2363_v50 }
 0x3aa   :  { %v2364_v51 = vpop.f32.mrf.mxu2 }
 0x3ad   :  { %2370 = vadd.xlane.f32.xlu1 %v2369_v52 }
 0x418   :  { %v2367_v53 = vpop.xlane.xlu1 %2366 }
 0x419   :  { %v2368_v54 = vmul.f32 0.03125, %v2367_v53 }
 0x41b   :  { %v2373_v56 = vmul.f32 %v2368_v54, %v2368_v54  ;;  %v2375_v0 = vsub.f32 %v2363_v50, %v2368_v54 }
 0x420   :  { %v2371_v55 = vpop.xlane.xlu1 %2370 }
 0x421   :  { %v2372_v8 = vmul.f32 0.03125, %v2371_v55 }
 0x423   :  { %v2374_v57 = vsub.f32 %v2372_v8, %v2373_v56 }
 0x425   :  { %v2376_v58 = vadd.f32 1e-05, %v2374_v57 }
 0x427   :  { %3821 = vrsqrt.f32 %v2376_v58  ;;  %vm2383_vm4 = vweird.f32 %v2376_v58 }
 0x42d   :  { %v3822_v16 = vpop.eup %3821 }
 0x42e   :  { %v2378_v59 = vmul.f32 %v3822_v16, %v2376_v58  ;;  %vm2384_vm3 = vweird.f32 %v3822_v16 }
 0x42f   :  { %vm2385_vm5 = vmor %vm2383_vm4, %vm2384_vm3 }
 0x430   :  { %v2379_v60 = vmul.f32 %v3822_v16, %v2378_v59 }
 0x432   :  { %v2380_v61 = vmul.f32 0.5, %v2379_v60 }
 0x434   :  { %v2381_v62 = vsub.f32 1.5, %v2380_v61 }
 0x436   :  { %v2382_v63 = vmul.f32 %v3822_v16, %v2381_v62 }
 0x438   :  { %v2386_v2 = vsel %vm2385_vm5, %v3822_v16, %v2382_v63 }
 0x439   :  { %v2387_v6 = vmul.f32 %v2386_v2, %v2375_v0 }
 0x43b   :  { %v2390_v7 = vmul.f32 %v3817_v1, %v2387_v6 }
 0x43d   :  { %v2393_v5 = vadd.f32 %v3818_v3, %v2390_v7 }
 0x43f   :  { %v2394_v10 = vmax.f32 %v2393_v5, 0.0 }
 0x441   :  { %2395 = vst [vmem:[%s4136_s9] sm:$0xff] %v2394_v10 }
 0x442   :  { %2400 = vsyncpa [#allocation3], 1 }
 0x443   :  { %2401 = vsyncpa [#allocation5], 1 }

</bundles_post_ra>
